<compile_context>
chip_gen: v7x
topology: tpu7x:2x2x1
jax: 0.10.0
libtpu: 0.0.40
codegen_flags: <defaults>
</compile_context>

<pallas_src>
import numpy as np
import jax
import jax.numpy as jnp
from jax import lax
from jax.experimental import pallas as pl
from jax.experimental.pallas import tpu as pltpu

C_OUT, H_OUT, W_OUT = 3, 16, 16
DEPTH = 4
K = 3
EMBED = 32
NPAD = 128                      # lane-dense column width for every slab
KAUG = 384                      # padded width of the block-diagonal linear input (>= 10*33)


def conv_out(h_in, padding, kernel_size, stride):
    return int((h_in + 2.0 * padding - (kernel_size - 1.0) - 1.0) / stride + 1.0)


_h1 = conv_out(H_OUT, 0, K, 1)   # 14
_h2 = conv_out(_h1, 0, K, 1)     # 12
_h3 = conv_out(_h2, 0, K, 1)     # 10

HH = (_h3, _h2, _h1, H_OUT)                 # spatial size per decoder stage (square)
CH = (4 * DEPTH, 2 * DEPTH, DEPTH, C_OUT)   # channels per decoder stage
F = CH[0] * HH[0] * HH[0]                   # prod(conv_shape) = 1600


# ----------------------------- Pallas kernel --------------------------------

def _fused_kernel(xaug_ref, wm1_ref, s1_ref, b1_ref, m2_ref, s2_ref, b2_ref,
                  m3_ref, s3_ref, b3_ref, o_ref):
    def shift_sum(s_ref, part):
        # Height taps as 0/1 matmuls on the MXU: no misaligned row RMW, no masked
        # stores, accumulation stays in registers.
        acc = jnp.dot(s_ref[0], part[:, 0:NPAD],
                      preferred_element_type=jnp.float32)
        for p in range(1, K):
            acc = acc + jnp.dot(s_ref[p], part[:, p * NPAD:(p + 1) * NPAD],
                                preferred_element_type=jnp.float32)
        return acc

    # Linear (folded in) + ConvT layer 1 + ReLU  (info['activation'] = nn.ReLU)
    part1 = jnp.dot(xaug_ref[...], wm1_ref[...],
                    preferred_element_type=jnp.float32)        # (bsq*10, 384)
    h1 = jnp.maximum(shift_sum(s1_ref, part1) + b1_ref[...], 0.0)   # (bsq*12, 128)

    # ConvT layer 2 + ReLU
    part2 = jnp.dot(h1, m2_ref[...], preferred_element_type=jnp.float32)
    h2 = jnp.maximum(shift_sum(s2_ref, part2) + b2_ref[...], 0.0)   # (bsq*14, 128)

    # ConvT layer 3 (no activation); single lane-dense store.
    part3 = jnp.dot(h2, m3_ref[...], preferred_element_type=jnp.float32)
    o_ref[...] = shift_sum(s3_ref, part3) + b3_ref[...]             # (bsq*16, 128)


def fused_decoder_pallas(xaug, wm1, s1, b1, m2, s2, b2, m3, s3, b3, bsq):
    args = (xaug, wm1, s1, b1, m2, s2, b2, m3, s3, b3)
    in_specs = [pl.BlockSpec(a.shape, lambda i, _n=a.ndim: (0,) * _n)
                for a in args]
    out_rows = bsq * H_OUT
    return pl.pallas_call(
        _fused_kernel,
        out_shape=jax.ShapeDtypeStruct((out_rows, NPAD), jnp.float32),
        grid=(1,),
        in_specs=in_specs,
        out_specs=pl.BlockSpec((out_rows, NPAD), lambda i: (0, 0)),
        compiler_params=pltpu.CompilerParams(dimension_semantics=("arbitrary",)),
    )(*args)


# ----------------------- parameter init + glue (plain JAX / numpy) -----------

def init_params(key):
    ks = jax.random.split(key, 8)
    w_lin = jax.random.normal(ks[0], (EMBED, F), jnp.float32) * 0.05
    b_lin = jax.random.normal(ks[1], (F,), jnp.float32) * 0.05
    wk, bk = [], []
    for i in range(3):
        cin, cout = CH[i], CH[i + 1]
        wk.append(jax.random.normal(ks[2 + 2 * i], (K, K, cin, cout), jnp.float32)
                  * (1.0 / np.sqrt(cin * K * K)))
        bk.append(jax.random.normal(ks[3 + 2 * i], (cout,), jnp.float32) * 0.05)
    return w_lin, b_lin, wk, bk


def _band_cat(Wnp, win, cin, wout, cout, rows):
    # M_cat[xi*cin+ci, p*NPAD + xo*cout+co] = W[p, xo-xi, ci, co]; rest zero.
    M = np.zeros((rows, K * NPAD), np.float32)
    for p in range(K):
        for xi in range(win):
            for q in range(K):
                xo = xi + q
                M[xi * cin:(xi + 1) * cin,
                  p * NPAD + xo * cout:p * NPAD + xo * cout + cout] = Wnp[p, q]
    return M


def _shift_mats(bsq, hin, hout):
    # S[p, b*hout + yi + p, b*hin + yi] = 1  (height shift as a 0/1 matmul)
    S = np.zeros((K, bsq * hout, bsq * hin), np.float32)
    for p in range(K):
        for b in range(bsq):
            for yi in range(hin):
                S[p, b * hout + yi + p, b * hin + yi] = 1.0
    return S


def _bias_row(bvec, wout, cout):
    r = np.zeros((1, NPAD), np.float32)
    r[0, :wout * cout] = np.tile(np.asarray(bvec), wout)   # col = xo*cout + co -> b[co]
    return r


def prepare_kernel_params(w_lin, b_lin, wk, bk, bsq):
    H0, W0, C0 = HH[0], HH[0], CH[0]
    E1 = EMBED + 1
    w_np = np.asarray(w_lin)          # (32, 1600)
    b_np = np.asarray(b_lin)          # (1600,)

    # Block-stacked linear weights (bias carried as one extra row per y-block):
    # xaug @ wstack == slab X0 with row b*H0+y, col xw*C0+c, where the PyTorch
    # linear column is f = c*H0*W0 + y*W0 + xw (NCHW flatten).
    wstack = np.zeros((H0 * E1, W0 * C0), np.float32)
    g = np.arange(W0 * C0)
    xw = g // C0
    c = g % C0
    for y in range(H0):
        f = c * (H0 * W0) + y * W0 + xw
        wstack[y * E1:y * E1 + EMBED, :] = w_np[:, f]
        wstack[y * E1 + EMBED, :] = b_np[f]

    # Band matrices (K taps concatenated along lanes, zero-padded to 128/block).
    m1 = _band_cat(np.asarray(wk[0]), HH[0], CH[0], HH[1], CH[1], HH[0] * CH[0])
    m2 = _band_cat(np.asarray(wk[1]), HH[1], CH[1], HH[2], CH[2], NPAD)
    m3 = _band_cat(np.asarray(wk[2]), HH[2], CH[2], HH[3], CH[3], NPAD)

    # Fold the 32->1600 linear (incl. its bias) into layer 1's band matmul.
    wm1 = np.zeros((KAUG, K * NPAD), np.float32)
    wm1[:H0 * E1, :] = wstack @ m1

    # Height-shift matrices per layer (batch-size specific).
    s1 = _shift_mats(bsq, HH[0], HH[1])
    s2 = _shift_mats(bsq, HH[1], HH[2])
    s3 = _shift_mats(bsq, HH[2], HH[3])

    b1 = _bias_row(bk[0], HH[1], CH[1])
    b2 = _bias_row(bk[1], HH[2], CH[2])
    b3 = _bias_row(bk[2], HH[3], CH[3])

    j = jnp.asarray
    return dict(wm1=j(wm1), s1=j(s1), b1=j(b1), m2=j(m2), s2=j(s2), b2=j(b2),
                m3=j(m3), s3=j(s3), b3=j(b3), bsq=bsq)


def obs_decoder_forward(x, kp):
    batch_shape = x.shape[:-1]
    xf = x.reshape(-1, EMBED)
    bsq = xf.shape[0]
    assert bsq == kp["bsq"], "shift matrices were prepared for a different batch size"
    H0, E1 = HH[0], EMBED + 1
    # Block-diagonal augmented input: xaug[b*H0+y, y*(E+1)+e] = x[b,e], last column
    # of each block is 1 (carries the linear bias). One tiny XLA op, then a single
    # fused pallas_call for linear + 3 ConvTranspose layers.
    xe = jnp.concatenate([xf, jnp.ones((bsq, 1), xf.dtype)], axis=1)      # (bsq, 33)
    eye = jnp.eye(H0, dtype=xf.dtype)
    xaug = (xe[:, None, None, :] * eye[None, :, :, None]).reshape(bsq * H0, H0 * E1)
    xaug = jnp.pad(xaug, ((0, 0), (0, KAUG - H0 * E1)))                   # (bsq*10, 384)

    out2d = fused_decoder_pallas(xaug, kp["wm1"], kp["s1"], kp["b1"],
                                 kp["m2"], kp["s2"], kp["b2"],
                                 kp["m3"], kp["s3"], kp["b3"], bsq)       # (bsq*16, 128)

    mean = (out2d[:, :W_OUT * C_OUT]
            .reshape(bsq, H_OUT, W_OUT, C_OUT)
            .transpose(0, 3, 1, 2)
            .reshape(*batch_shape, C_OUT, H_OUT, W_OUT))
    # TODO(synk): td.Independent(td.Normal(mean, 1), 3) has no Pallas equivalent;
    # the kernel returns the distribution mean (scale is the constant 1).
    return mean


# ----------------------------- pure-JAX reference ---------------------------

def reference_forward(x, w_lin, b_lin, wk, bk):
    batch_shape = x.shape[:-1]
    xf = x.reshape(-1, EMBED)
    h = jnp.dot(xf, w_lin, precision=lax.Precision.HIGHEST) + b_lin
    feat = h.reshape(-1, CH[0], HH[0], HH[0])             # NCHW
    for i in range(3):
        # ConvTranspose2d(stride=1, pad=0) == full conv with flipped kernel.
        km = jnp.transpose(wk[i], (3, 2, 0, 1))[:, :, ::-1, ::-1]   # OIHW flipped
        feat = lax.conv_general_dilated(
            feat, km, window_strides=(1, 1),
            padding=[(K - 1, K - 1), (K - 1, K - 1)],
            dimension_numbers=('NCHW', 'OIHW', 'NCHW'),
            precision=lax.Precision.HIGHEST)
        feat = feat + bk[i].reshape(1, -1, 1, 1)
        if i < 2:
            feat = jnp.maximum(feat, 0.0)
    return feat.reshape(*batch_shape, C_OUT, H_OUT, W_OUT)


if __name__ == "__main__":
    key = jax.random.PRNGKey(0)
    pkey, xkey = jax.random.split(key)
    w_lin, b_lin, wk, bk = init_params(pkey)

    x = jax.random.normal(xkey, (2, 4, EMBED), jnp.float32)   # batch_shape=(2,4) -> bsq=8
    bsq = int(np.prod(x.shape[:-1]))
    kp = prepare_kernel_params(w_lin, b_lin, wk, bk, bsq)

    mean = obs_decoder_forward(x, kp)
    mean = jax.block_until_ready(mean)

    ref = jax.block_until_ready(reference_forward(x, w_lin, b_lin, wk, bk))
    assert mean.shape == (2, 4, C_OUT, H_OUT, W_OUT), mean.shape
    err = float(jnp.max(jnp.abs(mean - ref)))
    # f32 dots may take a multi-pass bf16 MXU path; tolerance sized accordingly.
    assert err < 2e-2, f"max abs error {err}"
    print("KERNEL_OK")
</pallas_src>

<mosaic_0001>
module attributes {stable_mosaic.version = 11 : i64} {
  func.func @_fused_kernel(%arg0: i32, %arg1: memref<80x384xf32, #tpu.memory_space<vmem>>, %arg2: memref<384x384xf32, #tpu.memory_space<vmem>>, %arg3: memref<3x96x80xf32, #tpu.memory_space<vmem>>, %arg4: memref<1x128xf32, #tpu.memory_space<vmem>>, %arg5: memref<128x384xf32, #tpu.memory_space<vmem>>, %arg6: memref<3x112x96xf32, #tpu.memory_space<vmem>>, %arg7: memref<1x128xf32, #tpu.memory_space<vmem>>, %arg8: memref<128x384xf32, #tpu.memory_space<vmem>>, %arg9: memref<3x128x112xf32, #tpu.memory_space<vmem>>, %arg10: memref<1x128xf32, #tpu.memory_space<vmem>>, %arg11: memref<128x128xf32, #tpu.memory_space<vmem>>) attributes {dimension_semantics = [#tpu.dimension_semantics<arbitrary>], iteration_bounds = array<i64: 1>, scalar_prefetch = 0 : i64, scratch_operands = 0 : i64, tpu.core_type = #tpu.core_type<tc>, window_params = [{pipeline_mode = #tpu.pipeline_mode<synchronous>, transform_indices = @transform_0, window_bounds = array<i64: 80, 384>}, {pipeline_mode = #tpu.pipeline_mode<synchronous>, transform_indices = @transform_1, window_bounds = array<i64: 384, 384>}, {pipeline_mode = #tpu.pipeline_mode<synchronous>, transform_indices = @transform_2, window_bounds = array<i64: 3, 96, 80>}, {pipeline_mode = #tpu.pipeline_mode<synchronous>, transform_indices = @transform_3, window_bounds = array<i64: 1, 128>}, {pipeline_mode = #tpu.pipeline_mode<synchronous>, transform_indices = @transform_4, window_bounds = array<i64: 128, 384>}, {pipeline_mode = #tpu.pipeline_mode<synchronous>, transform_indices = @transform_5, window_bounds = array<i64: 3, 112, 96>}, {pipeline_mode = #tpu.pipeline_mode<synchronous>, transform_indices = @transform_6, window_bounds = array<i64: 1, 128>}, {pipeline_mode = #tpu.pipeline_mode<synchronous>, transform_indices = @transform_7, window_bounds = array<i64: 128, 384>}, {pipeline_mode = #tpu.pipeline_mode<synchronous>, transform_indices = @transform_8, window_bounds = array<i64: 3, 128, 112>}, {pipeline_mode = #tpu.pipeline_mode<synchronous>, transform_indices = @transform_9, window_bounds = array<i64: 1, 128>}, {pipeline_mode = #tpu.pipeline_mode<synchronous>, transform_indices = @transform_10, window_bounds = array<i64: 128, 128>}]} {
    %c0 = arith.constant 0 : index
    %c0_0 = arith.constant 0 : index
    %0 = vector.load %arg1[%c0, %c0_0] : memref<80x384xf32, #tpu.memory_space<vmem>>, vector<80x384xf32>
    %c0_1 = arith.constant 0 : index
    %c0_2 = arith.constant 0 : index
    %1 = vector.load %arg2[%c0_1, %c0_2] : memref<384x384xf32, #tpu.memory_space<vmem>>, vector<384x384xf32>
    %cst = arith.constant dense<0.000000e+00> : vector<80x384xf32>
    %2 = tpu.matmul %0, %1, %cst {dimension_numbers = #tpu.dot_dimension_numbers<[1], [0], [0], [1], [0, 0, 1, 1], [], []>} : vector<80x384xf32>, vector<384x384xf32>, vector<80x384xf32> -> vector<80x384xf32>
    %c0_3 = arith.constant 0 : index
    %c0_4 = arith.constant 0 : index
    %c0_5 = arith.constant 0 : index
    %3 = vector.load %arg3[%c0_3, %c0_4, %c0_5] : memref<3x96x80xf32, #tpu.memory_space<vmem>>, vector<1x96x80xf32>
    %4 = vector.shape_cast %3 : vector<1x96x80xf32> to vector<96x80xf32>
    %5 = vector.extract_strided_slice %2 {offsets = [0, 0], sizes = [80, 128], strides = [1, 1]} : vector<80x384xf32> to vector<80x128xf32>
    %cst_6 = arith.constant dense<0.000000e+00> : vector<96x128xf32>
    %6 = tpu.matmul %4, %5, %cst_6 {dimension_numbers = #tpu.dot_dimension_numbers<[1], [0], [0], [1], [0, 0, 1, 1], [], []>} : vector<96x80xf32>, vector<80x128xf32>, vector<96x128xf32> -> vector<96x128xf32>
    %c1 = arith.constant 1 : index
    %c0_7 = arith.constant 0 : index
    %c0_8 = arith.constant 0 : index
    %7 = vector.load %arg3[%c1, %c0_7, %c0_8] : memref<3x96x80xf32, #tpu.memory_space<vmem>>, vector<1x96x80xf32>
    %8 = vector.shape_cast %7 : vector<1x96x80xf32> to vector<96x80xf32>
    %9 = vector.extract_strided_slice %2 {offsets = [0, 128], sizes = [80, 128], strides = [1, 1]} : vector<80x384xf32> to vector<80x128xf32>
    %cst_9 = arith.constant dense<0.000000e+00> : vector<96x128xf32>
    %10 = tpu.matmul %8, %9, %cst_9 {dimension_numbers = #tpu.dot_dimension_numbers<[1], [0], [0], [1], [0, 0, 1, 1], [], []>} : vector<96x80xf32>, vector<80x128xf32>, vector<96x128xf32> -> vector<96x128xf32>
    %11 = arith.addf %6, %10 : vector<96x128xf32>
    %c2 = arith.constant 2 : index
    %c0_10 = arith.constant 0 : index
    %c0_11 = arith.constant 0 : index
    %12 = vector.load %arg3[%c2, %c0_10, %c0_11] : memref<3x96x80xf32, #tpu.memory_space<vmem>>, vector<1x96x80xf32>
    %13 = vector.shape_cast %12 : vector<1x96x80xf32> to vector<96x80xf32>
    %14 = vector.extract_strided_slice %2 {offsets = [0, 256], sizes = [80, 128], strides = [1, 1]} : vector<80x384xf32> to vector<80x128xf32>
    %cst_12 = arith.constant dense<0.000000e+00> : vector<96x128xf32>
    %15 = tpu.matmul %13, %14, %cst_12 {dimension_numbers = #tpu.dot_dimension_numbers<[1], [0], [0], [1], [0, 0, 1, 1], [], []>} : vector<96x80xf32>, vector<80x128xf32>, vector<96x128xf32> -> vector<96x128xf32>
    %16 = arith.addf %11, %15 : vector<96x128xf32>
    %c0_13 = arith.constant 0 : index
    %c0_14 = arith.constant 0 : index
    %17 = vector.load %arg4[%c0_13, %c0_14] : memref<1x128xf32, #tpu.memory_space<vmem>>, vector<1x128xf32>
    %18 = vector.broadcast %17 : vector<1x128xf32> to vector<96x128xf32>
    %19 = arith.addf %16, %18 : vector<96x128xf32>
    %cst_15 = arith.constant 0.000000e+00 : f32
    %20 = vector.broadcast %cst_15 : f32 to vector<96x128xf32>
    %21 = arith.maximumf %19, %20 : vector<96x128xf32>
    %c0_16 = arith.constant 0 : index
    %c0_17 = arith.constant 0 : index
    %22 = vector.load %arg5[%c0_16, %c0_17] : memref<128x384xf32, #tpu.memory_space<vmem>>, vector<128x384xf32>
    %cst_18 = arith.constant dense<0.000000e+00> : vector<96x384xf32>
    %23 = tpu.matmul %21, %22, %cst_18 {dimension_numbers = #tpu.dot_dimension_numbers<[1], [0], [0], [1], [0, 0, 1, 1], [], []>} : vector<96x128xf32>, vector<128x384xf32>, vector<96x384xf32> -> vector<96x384xf32>
    %c0_19 = arith.constant 0 : index
    %c0_20 = arith.constant 0 : index
    %c0_21 = arith.constant 0 : index
    %24 = vector.load %arg6[%c0_19, %c0_20, %c0_21] : memref<3x112x96xf32, #tpu.memory_space<vmem>>, vector<1x112x96xf32>
    %25 = vector.shape_cast %24 : vector<1x112x96xf32> to vector<112x96xf32>
    %26 = vector.extract_strided_slice %23 {offsets = [0, 0], sizes = [96, 128], strides = [1, 1]} : vector<96x384xf32> to vector<96x128xf32>
    %cst_22 = arith.constant dense<0.000000e+00> : vector<112x128xf32>
    %27 = tpu.matmul %25, %26, %cst_22 {dimension_numbers = #tpu.dot_dimension_numbers<[1], [0], [0], [1], [0, 0, 1, 1], [], []>} : vector<112x96xf32>, vector<96x128xf32>, vector<112x128xf32> -> vector<112x128xf32>
    %c1_23 = arith.constant 1 : index
    %c0_24 = arith.constant 0 : index
    %c0_25 = arith.constant 0 : index
    %28 = vector.load %arg6[%c1_23, %c0_24, %c0_25] : memref<3x112x96xf32, #tpu.memory_space<vmem>>, vector<1x112x96xf32>
    %29 = vector.shape_cast %28 : vector<1x112x96xf32> to vector<112x96xf32>
    %30 = vector.extract_strided_slice %23 {offsets = [0, 128], sizes = [96, 128], strides = [1, 1]} : vector<96x384xf32> to vector<96x128xf32>
    %cst_26 = arith.constant dense<0.000000e+00> : vector<112x128xf32>
    %31 = tpu.matmul %29, %30, %cst_26 {dimension_numbers = #tpu.dot_dimension_numbers<[1], [0], [0], [1], [0, 0, 1, 1], [], []>} : vector<112x96xf32>, vector<96x128xf32>, vector<112x128xf32> -> vector<112x128xf32>
    %32 = arith.addf %27, %31 : vector<112x128xf32>
    %c2_27 = arith.constant 2 : index
    %c0_28 = arith.constant 0 : index
    %c0_29 = arith.constant 0 : index
    %33 = vector.load %arg6[%c2_27, %c0_28, %c0_29] : memref<3x112x96xf32, #tpu.memory_space<vmem>>, vector<1x112x96xf32>
    %34 = vector.shape_cast %33 : vector<1x112x96xf32> to vector<112x96xf32>
    %35 = vector.extract_strided_slice %23 {offsets = [0, 256], sizes = [96, 128], strides = [1, 1]} : vector<96x384xf32> to vector<96x128xf32>
    %cst_30 = arith.constant dense<0.000000e+00> : vector<112x128xf32>
    %36 = tpu.matmul %34, %35, %cst_30 {dimension_numbers = #tpu.dot_dimension_numbers<[1], [0], [0], [1], [0, 0, 1, 1], [], []>} : vector<112x96xf32>, vector<96x128xf32>, vector<112x128xf32> -> vector<112x128xf32>
    %37 = arith.addf %32, %36 : vector<112x128xf32>
    %c0_31 = arith.constant 0 : index
    %c0_32 = arith.constant 0 : index
    %38 = vector.load %arg7[%c0_31, %c0_32] : memref<1x128xf32, #tpu.memory_space<vmem>>, vector<1x128xf32>
    %39 = vector.broadcast %38 : vector<1x128xf32> to vector<112x128xf32>
    %40 = arith.addf %37, %39 : vector<112x128xf32>
    %cst_33 = arith.constant 0.000000e+00 : f32
    %41 = vector.broadcast %cst_33 : f32 to vector<112x128xf32>
    %42 = arith.maximumf %40, %41 : vector<112x128xf32>
    %c0_34 = arith.constant 0 : index
    %c0_35 = arith.constant 0 : index
    %43 = vector.load %arg8[%c0_34, %c0_35] : memref<128x384xf32, #tpu.memory_space<vmem>>, vector<128x384xf32>
    %cst_36 = arith.constant dense<0.000000e+00> : vector<112x384xf32>
    %44 = tpu.matmul %42, %43, %cst_36 {dimension_numbers = #tpu.dot_dimension_numbers<[1], [0], [0], [1], [0, 0, 1, 1], [], []>} : vector<112x128xf32>, vector<128x384xf32>, vector<112x384xf32> -> vector<112x384xf32>
    %c0_37 = arith.constant 0 : index
    %c0_38 = arith.constant 0 : index
    %c0_39 = arith.constant 0 : index
    %45 = vector.load %arg9[%c0_37, %c0_38, %c0_39] : memref<3x128x112xf32, #tpu.memory_space<vmem>>, vector<1x128x112xf32>
    %46 = vector.shape_cast %45 : vector<1x128x112xf32> to vector<128x112xf32>
    %47 = vector.extract_strided_slice %44 {offsets = [0, 0], sizes = [112, 128], strides = [1, 1]} : vector<112x384xf32> to vector<112x128xf32>
    %cst_40 = arith.constant dense<0.000000e+00> : vector<128x128xf32>
    %48 = tpu.matmul %46, %47, %cst_40 {dimension_numbers = #tpu.dot_dimension_numbers<[1], [0], [0], [1], [0, 0, 1, 1], [], []>} : vector<128x112xf32>, vector<112x128xf32>, vector<128x128xf32> -> vector<128x128xf32>
    %c1_41 = arith.constant 1 : index
    %c0_42 = arith.constant 0 : index
    %c0_43 = arith.constant 0 : index
    %49 = vector.load %arg9[%c1_41, %c0_42, %c0_43] : memref<3x128x112xf32, #tpu.memory_space<vmem>>, vector<1x128x112xf32>
    %50 = vector.shape_cast %49 : vector<1x128x112xf32> to vector<128x112xf32>
    %51 = vector.extract_strided_slice %44 {offsets = [0, 128], sizes = [112, 128], strides = [1, 1]} : vector<112x384xf32> to vector<112x128xf32>
    %cst_44 = arith.constant dense<0.000000e+00> : vector<128x128xf32>
    %52 = tpu.matmul %50, %51, %cst_44 {dimension_numbers = #tpu.dot_dimension_numbers<[1], [0], [0], [1], [0, 0, 1, 1], [], []>} : vector<128x112xf32>, vector<112x128xf32>, vector<128x128xf32> -> vector<128x128xf32>
    %53 = arith.addf %48, %52 : vector<128x128xf32>
    %c2_45 = arith.constant 2 : index
    %c0_46 = arith.constant 0 : index
    %c0_47 = arith.constant 0 : index
    %54 = vector.load %arg9[%c2_45, %c0_46, %c0_47] : memref<3x128x112xf32, #tpu.memory_space<vmem>>, vector<1x128x112xf32>
    %55 = vector.shape_cast %54 : vector<1x128x112xf32> to vector<128x112xf32>
    %56 = vector.extract_strided_slice %44 {offsets = [0, 256], sizes = [112, 128], strides = [1, 1]} : vector<112x384xf32> to vector<112x128xf32>
    %cst_48 = arith.constant dense<0.000000e+00> : vector<128x128xf32>
    %57 = tpu.matmul %55, %56, %cst_48 {dimension_numbers = #tpu.dot_dimension_numbers<[1], [0], [0], [1], [0, 0, 1, 1], [], []>} : vector<128x112xf32>, vector<112x128xf32>, vector<128x128xf32> -> vector<128x128xf32>
    %58 = arith.addf %53, %57 : vector<128x128xf32>
    %c0_49 = arith.constant 0 : index
    %c0_50 = arith.constant 0 : index
    %59 = vector.load %arg10[%c0_49, %c0_50] : memref<1x128xf32, #tpu.memory_space<vmem>>, vector<1x128xf32>
    %60 = vector.broadcast %59 : vector<1x128xf32> to vector<128x128xf32>
    %61 = arith.addf %58, %60 : vector<128x128xf32>
    %c0_51 = arith.constant 0 : index
    %c0_52 = arith.constant 0 : index
    %62 = vector.load %arg11[%c0_51, %c0_52] : memref<128x128xf32, #tpu.memory_space<vmem>>, vector<128x128xf32>
    tpu.vector_store %arg11[%c0_51, %c0_52], %61 {strides = array<i32>} : memref<128x128xf32, #tpu.memory_space<vmem>>, vector<128x128xf32>,
    return
  }
  func.func @transform_0(%arg0: i32) -> (i32, i32) {
    %c0_i32 = arith.constant 0 : i32
    %c0_i32_0 = arith.constant 0 : i32
    %c0_i32_1 = arith.constant 0 : i32
    return %c0_i32, %c0_i32_0 : i32, i32
  }
  func.func @transform_1(%arg0: i32) -> (i32, i32) {
    %c0_i32 = arith.constant 0 : i32
    %c0_i32_0 = arith.constant 0 : i32
    %c0_i32_1 = arith.constant 0 : i32
    return %c0_i32, %c0_i32_0 : i32, i32
  }
  func.func @transform_2(%arg0: i32) -> (i32, i32, i32) {
    %c0_i32 = arith.constant 0 : i32
    %c0_i32_0 = arith.constant 0 : i32
    %c0_i32_1 = arith.constant 0 : i32
    %c0_i32_2 = arith.constant 0 : i32
    return %c0_i32, %c0_i32_0, %c0_i32_1 : i32, i32, i32
  }
  func.func @transform_3(%arg0: i32) -> (i32, i32) {
    %c0_i32 = arith.constant 0 : i32
    %c0_i32_0 = arith.constant 0 : i32
    %c0_i32_1 = arith.constant 0 : i32
    return %c0_i32, %c0_i32_0 : i32, i32
  }
  func.func @transform_4(%arg0: i32) -> (i32, i32) {
    %c0_i32 = arith.constant 0 : i32
    %c0_i32_0 = arith.constant 0 : i32
    %c0_i32_1 = arith.constant 0 : i32
    return %c0_i32, %c0_i32_0 : i32, i32
  }
  func.func @transform_5(%arg0: i32) -> (i32, i32, i32) {
    %c0_i32 = arith.constant 0 : i32
    %c0_i32_0 = arith.constant 0 : i32
    %c0_i32_1 = arith.constant 0 : i32
    %c0_i32_2 = arith.constant 0 : i32
    return %c0_i32, %c0_i32_0, %c0_i32_1 : i32, i32, i32
  }
  func.func @transform_6(%arg0: i32) -> (i32, i32) {
    %c0_i32 = arith.constant 0 : i32
    %c0_i32_0 = arith.constant 0 : i32
    %c0_i32_1 = arith.constant 0 : i32
    return %c0_i32, %c0_i32_0 : i32, i32
  }
  func.func @transform_7(%arg0: i32) -> (i32, i32) {
    %c0_i32 = arith.constant 0 : i32
    %c0_i32_0 = arith.constant 0 : i32
    %c0_i32_1 = arith.constant 0 : i32
    return %c0_i32, %c0_i32_0 : i32, i32
  }
  func.func @transform_8(%arg0: i32) -> (i32, i32, i32) {
    %c0_i32 = arith.constant 0 : i32
    %c0_i32_0 = arith.constant 0 : i32
    %c0_i32_1 = arith.constant 0 : i32
    %c0_i32_2 = arith.constant 0 : i32
    return %c0_i32, %c0_i32_0, %c0_i32_1 : i32, i32, i32
  }
  func.func @transform_9(%arg0: i32) -> (i32, i32) {
    %c0_i32 = arith.constant 0 : i32
    %c0_i32_0 = arith.constant 0 : i32
    %c0_i32_1 = arith.constant 0 : i32
    return %c0_i32, %c0_i32_0 : i32, i32
  }
  func.func @transform_10(%arg0: i32) -> (i32, i32) {
    %c0_i32 = arith.constant 0 : i32
    %c0_i32_0 = arith.constant 0 : i32
    %c0_i32_1 = arith.constant 0 : i32
    return %c0_i32, %c0_i32_0 : i32, i32
  }
}

</mosaic_0001>

<bundles_post_ra>
// kernel: tpu_custom_call.1
= control target key start
LH: loop header
LB: loop body
LE: loop exit
PB: predicated region body
PF: predicated region fallthrough
CT: control target
= control target key end

     0   :  { %15 = vsyncpa [#allocation3], 0  ;;  %s6556_s0 = inlined_call_operand.hbm [shape: f32[80,384], index: 0, kind: input, shape index: {}]   ;;  %s6557_s1 = inlined_call_operand.vmem [shape: f32[384,384], index: 1, kind: input, shape index: {}]   ;;  %s6558_s2 = inlined_call_operand.vmem [shape: f32[3,96,80], index: 2, kind: input, shape index: {}]   ;;  %s6559_s3 = inlined_call_operand.vmem [shape: f32[1,128], index: 3, kind: input, shape index: {}]   ;;  %s6560_s4 = inlined_call_operand.vmem [shape: f32[128,384], index: 4, kind: input, shape index: {}]   ;;  %s6561_s5 = inlined_call_operand.vmem [shape: f32[3,112,96], index: 5, kind: input, shape index: {}]   ;;  %s6562_s6 = inlined_call_operand.vmem [shape: f32[1,128], index: 6, kind: input, shape index: {}]   ;;  %s6563_s7 = inlined_call_operand.hbm [shape: f32[128,384], index: 7, kind: input, shape index: {}]   ;;  %s6564_s8 = inlined_call_operand.vmem [shape: f32[3,128,112], index: 8, kind: input, shape index: {}]   ;;  %s6565_s9 = inlined_call_operand.vmem [shape: f32[1,128], index: 9, kind: input, shape index: {}]   ;;  %s6566_s10 = inlined_call_operand.hbm [shape: f32[128,128], index: 10, kind: output, shape index: {}]  }
   0x1   :  { %16 = vsyncpa [#allocation6], 0 }
   0x2   :  { %17 = vsyncpa [#allocation4], 0  ;;  %s5089_s13 = smov [#allocation2]   ;;  %s5017_s17 = scalar_lea.hbm %s6556_s0, 3840 }
   0x3   :  { %s23_s14 = sshll.u32 %s5089_s13, 4  ;;  %p5018_p0 = scmp.ne.s32.totalorder %s6556_s0, %s5017_s17  ;;  %s24_s14 = int_to_ptr.vmem [resolvable:$true] %s23_s14 }
   0x4   :  { %p5021_p1 = scmp.lt.u32.totalorder %s5017_s17, %s6556_s0 }
   0x6   :  { %p5023_p2 = pnand %p5021_p1, %p5018_p0 }
   0x8   :  { %5026 = shalt.err (!%p5023_p2)
}
   0x9   :  { %s5027_s22 = scalar_lea.vmem %s24_s14, 3840  ;;  %p5032_p4 = scmp.lt.s32.totalorder %s24_s14, %s24_s14 }
   0xa   :  { %p5028_p3 = scmp.ne.s32.totalorder %s24_s14, %s5027_s22  ;;  %p5033_p5 = scmp.lt.s32.totalorder %s5027_s22, %s5027_s22 }
   0xc   :  { %p5034_p6 = por %p5033_p5, %p5032_p4 }
   0xe   :  { %p5035_p7 = pnand %p5034_p6, %p5028_p3 }
  0x10   :  { %5038 = shalt.err (!%p5035_p7)
}
  0x11   :  { %s5090_s23 = smov 384   ;;  %s5091_s24 = smov 24  }
  0x12   :  { %29 = dma.hbm_to_vmem [thread:$0]  %s6556_s0, 3840, %s24_s14, [#allocation3], %s5090_s23, %s5090_s23, %s5091_s24  }
  0x13   :  { %s5092_s27 = smov [#allocation5]   ;;  %s5039_s11 = scalar_lea.hbm %s6563_s7, 6144 }
  0x14   :  { %s47_s28 = sshll.u32 %s5092_s27, 4  ;;  %p5040_p8 = scmp.ne.s32.totalorder %s6563_s7, %s5039_s11  ;;  %s48_s28 = int_to_ptr.vmem [resolvable:$true] %s47_s28 }
  0x15   :  { %p5043_p9 = scmp.lt.u32.totalorder %s5039_s11, %s6563_s7 }
  0x17   :  { %p5045_p10 = pnand %p5043_p9, %p5040_p8 }
  0x19   :  { %5048 = shalt.err (!%p5045_p10)
}
  0x1a   :  { %s5049_s17 = scalar_lea.vmem %s48_s28, 6144  ;;  %p5054_p12 = scmp.lt.s32.totalorder %s48_s28, %s48_s28 }
  0x1b   :  { %p5050_p11 = scmp.ne.s32.totalorder %s48_s28, %s5049_s17  ;;  %p5055_p13 = scmp.lt.s32.totalorder %s5049_s17, %s5049_s17 }
  0x1d   :  { %p5056_p0 = por %p5055_p13, %p5054_p12 }
  0x1f   :  { %p5057_p1 = pnand %p5056_p0, %p5050_p11 }
  0x21   :  { %5060 = shalt.err (!%p5057_p1)
}
  0x22   :  { %53 = dma.hbm_to_vmem [thread:$0]  %s6563_s7, 6144, %s48_s28, [#allocation6], %s5090_s23, %s5090_s23, %s5091_s24  }
  0x23   :  { %5083 = dma.done.wait [#allocation3], 3840  }
  0x24   :  { %5084 = vsyncadd [#allocation3], 4294963456 }
  0x25   :  { %5085 = dma.done.wait [#allocation6], 6144  }
  0x26   :  { %5086 = vsyncadd [#allocation6], 4294961152  ;;  %v5093_v0 = vmov 0.0   ;;  %v95_v1 = vld [vmem:[%s6557_s1 + $0x8] sm:$0xff]  ;;  %v98_v2 = vld [vmem:[%s6557_s1 + $0x20] sm:$0xff]  ;;  %vm743_vm0 = vcmask 654336  }
  0x27   :  { %427 = vmatprep.mubr.f32.mxu1 %v5093_v0  ;;  %v191_v3 = vld [vmem:[%s6557_s1 + $0x308] sm:$0xff]  ;;  %v4401_v4 = vpack.c.bf16 %v98_v2, %v95_v1  ;;  %v194_v5 = vld [vmem:[%s6557_s1 + $0x320] sm:$0xff]  ;;  %v97_v7 = vld [vmem:[%s6557_s1 + $0x18] sm:$0xff]  ;;  %vm1622_vm1 = vcmask 785408   ;;  %vm2583_vm2 = vcmask 916480  }
  0x28   :  { %v94_v6 = vld [vmem:[%s6557_s1] sm:$0xff]  ;;  %v4465_v8 = vpack.c.bf16 %v194_v5, %v191_v3  ;;  %v193_v11 = vld [vmem:[%s6557_s1 + $0x318] sm:$0xff]  ;;  %v104_v14 = vld [vmem:[%s6557_s1 + $0x50] sm:$0xff] }
  0x29   :  { %v4403_v9 = vpack.c.bf16 %v97_v7, %v94_v6  ;;  %v190_v10 = vld [vmem:[%s6557_s1 + $0x300] sm:$0xff]  ;;  %v101_v12 = vld [vmem:[%s6557_s1 + $0x38] sm:$0xff]  ;;  %4402 = vmatprep.subr.bf16.mxu0 %v4401_v4  ;;  %v200_v16 = vld [vmem:[%s6557_s1 + $0x350] sm:$0xff] }
  0x2a   :  { %v4467_v13 = vpack.c.bf16 %v193_v11, %v190_v10  ;;  %v197_v15 = vld [vmem:[%s6557_s1 + $0x338] sm:$0xff]  ;;  %4466 = vmatprep.subr.bf16.mxu1 %v4465_v8  ;;  %v4405_v17 = vpack.c.bf16 %v104_v14, %v101_v12  ;;  %v100_v19 = vld [vmem:[%s6557_s1 + $0x30] sm:$0xff]  ;;  %v103_v20 = vld [vmem:[%s6557_s1 + $0x48] sm:$0xff] }
  0x2b   :  { %4404 = vmatpush1.bf16.msra.mxu0 %v4403_v9  ;;  %v4469_v18 = vpack.c.bf16 %v200_v16, %v197_v15  ;;  %v196_v21 = vld [vmem:[%s6557_s1 + $0x330] sm:$0xff]  ;;  %v4407_v22 = vpack.c.bf16 %v103_v20, %v100_v19  ;;  %v199_v23 = vld [vmem:[%s6557_s1 + $0x348] sm:$0xff]  ;;  %v110_v25 = vld [vmem:[%s6557_s1 + $0x80] sm:$0xff] }
  0x2c   :  { %4468 = vmatpush1.bf16.msra.mxu1 %v4467_v13  ;;  %v107_v24 = vld [vmem:[%s6557_s1 + $0x68] sm:$0xff]  ;;  %4406 = vmatprep.subr.bf16.mxu0 %v4405_v17  ;;  %v4471_v26 = vpack.c.bf16 %v199_v23, %v196_v21  ;;  %v206_v29 = vld [vmem:[%s6557_s1 + $0x380] sm:$0xff]  ;;  %v109_v32 = vld [vmem:[%s6557_s1 + $0x78] sm:$0xff] }
  0x2d   :  { %4470 = vmatprep.subr.bf16.mxu1 %v4469_v18  ;;  %v4409_v27 = vpack.c.bf16 %v110_v25, %v107_v24  ;;  %v203_v28 = vld [vmem:[%s6557_s1 + $0x368] sm:$0xff]  ;;  %v106_v30 = vld [vmem:[%s6557_s1 + $0x60] sm:$0xff]  ;;  %v205_v34 = vld [vmem:[%s6557_s1 + $0x378] sm:$0xff] }
  0x2e   :  { %v4473_v31 = vpack.c.bf16 %v206_v29, %v203_v28  ;;  %v202_v33 = vld [vmem:[%s6557_s1 + $0x360] sm:$0xff]  ;;  %v4411_v35 = vpack.c.bf16 %v109_v32, %v106_v30  ;;  %v113_v36 = vld [vmem:[%s6557_s1 + $0x98] sm:$0xff]  ;;  %v116_v37 = vld [vmem:[%s6557_s1 + $0xb0] sm:$0xff] }
  0x2f   :  { %4408 = vmatpush1.bf16.msra.mxu0 %v4407_v22  ;;  %v209_v38 = vld [vmem:[%s6557_s1 + $0x398] sm:$0xff]  ;;  %v4475_v39 = vpack.c.bf16 %v205_v34, %v202_v33  ;;  %v4413_v40 = vpack.c.bf16 %v116_v37, %v113_v36  ;;  %v212_v41 = vld [vmem:[%s6557_s1 + $0x3b0] sm:$0xff]  ;;  %v115_v43 = vld [vmem:[%s6557_s1 + $0xa8] sm:$0xff] }
  0x30   :  { %4472 = vmatpush1.bf16.msra.mxu1 %v4471_v26  ;;  %4410 = vmatprep.subr.bf16.mxu0 %v4409_v27  ;;  %v112_v42 = vld [vmem:[%s6557_s1 + $0x90] sm:$0xff]  ;;  %v4477_v44 = vpack.c.bf16 %v212_v41, %v209_v38  ;;  %v211_v46 = vld [vmem:[%s6557_s1 + $0x3a8] sm:$0xff]  ;;  %v122_v48 = vld [vmem:[%s6557_s1 + $0xe0] sm:$0xff] }
  0x31   :  { %4474 = vmatprep.subr.bf16.mxu1 %v4473_v31  ;;  %v208_v45 = vld [vmem:[%s6557_s1 + $0x390] sm:$0xff]  ;;  %v119_v47 = vld [vmem:[%s6557_s1 + $0xc8] sm:$0xff]  ;;  %v218_v50 = vld [vmem:[%s6557_s1 + $0x3e0] sm:$0xff]  ;;  %v4415_v51 = vpack.c.bf16 %v115_v43, %v112_v42 }
  0x32   :  { %v215_v49 = vld [vmem:[%s6557_s1 + $0x3c8] sm:$0xff]  ;;  %v4479_v52 = vpack.c.bf16 %v211_v46, %v208_v45  ;;  %v4417_v53 = vpack.c.bf16 %v122_v48, %v119_v47  ;;  %v118_v54 = vld [vmem:[%s6557_s1 + $0xc0] sm:$0xff]  ;;  %v121_v55 = vld [vmem:[%s6557_s1 + $0xd8] sm:$0xff] }
  0x33   :  { %4412 = vmatpush1.bf16.msra.mxu0 %v4411_v35  ;;  %v214_v56 = vld [vmem:[%s6557_s1 + $0x3c0] sm:$0xff]  ;;  %v4481_v57 = vpack.c.bf16 %v218_v50, %v215_v49  ;;  %v217_v58 = vld [vmem:[%s6557_s1 + $0x3d8] sm:$0xff]  ;;  %v128_v60 = vld [vmem:[%s6557_s1 + $0x110] sm:$0xff]  ;;  %v4419_v63 = vpack.c.bf16 %v121_v55, %v118_v54 }
  0x34   :  { %4476 = vmatpush1.bf16.msra.mxu1 %v4475_v39  ;;  %4414 = vmatprep.subr.bf16.mxu0 %v4413_v40  ;;  %v125_v59 = vld [vmem:[%s6557_s1 + $0xf8] sm:$0xff]  ;;  %v224_v62 = vld [vmem:[%s6557_s1 + $0x410] sm:$0xff]  ;;  %v4483_v1 = vpack.c.bf16 %v217_v58, %v214_v56  ;;  %v127_v4 = vld [vmem:[%s6557_s1 + $0x108] sm:$0xff] }
  0x35   :  { %4478 = vmatprep.subr.bf16.mxu1 %v4477_v44  ;;  %v221_v61 = vld [vmem:[%s6557_s1 + $0x3f8] sm:$0xff]  ;;  %v4421_v2 = vpack.c.bf16 %v128_v60, %v125_v59  ;;  %v124_v3 = vld [vmem:[%s6557_s1 + $0xf0] sm:$0xff]  ;;  %v223_v7 = vld [vmem:[%s6557_s1 + $0x408] sm:$0xff] }
  0x36   :  { %v220_v5 = vld [vmem:[%s6557_s1 + $0x3f0] sm:$0xff]  ;;  %v4485_v6 = vpack.c.bf16 %v224_v62, %v221_v61  ;;  %v131_v8 = vld [vmem:[%s6557_s1 + $0x128] sm:$0xff]  ;;  %v134_v9 = vld [vmem:[%s6557_s1 + $0x140] sm:$0xff]  ;;  %v4423_v12 = vpack.c.bf16 %v127_v4, %v124_v3 }
  0x37   :  { %4416 = vmatpush1.bf16.msra.mxu0 %v4415_v51  ;;  %v227_v10 = vld [vmem:[%s6557_s1 + $0x428] sm:$0xff]  ;;  %v230_v11 = vld [vmem:[%s6557_s1 + $0x440] sm:$0xff]  ;;  %v4487_v13 = vpack.c.bf16 %v223_v7, %v220_v5  ;;  %v4425_v14 = vpack.c.bf16 %v134_v9, %v131_v8  ;;  %v133_v16 = vld [vmem:[%s6557_s1 + $0x138] sm:$0xff] }
  0x38   :  { %4480 = vmatpush1.bf16.msra.mxu1 %v4479_v52  ;;  %4418 = vmatprep.subr.bf16.mxu0 %v4417_v53  ;;  %v130_v15 = vld [vmem:[%s6557_s1 + $0x120] sm:$0xff]  ;;  %v4489_v18 = vpack.c.bf16 %v230_v11, %v227_v10  ;;  %v229_v19 = vld [vmem:[%s6557_s1 + $0x438] sm:$0xff]  ;;  %v140_v21 = vld [vmem:[%s6557_s1 + $0x170] sm:$0xff] }
  0x39   :  { %4482 = vmatprep.subr.bf16.mxu1 %v4481_v57  ;;  %v226_v17 = vld [vmem:[%s6557_s1 + $0x420] sm:$0xff]  ;;  %v137_v20 = vld [vmem:[%s6557_s1 + $0x158] sm:$0xff]  ;;  %v236_v23 = vld [vmem:[%s6557_s1 + $0x470] sm:$0xff]  ;;  %v4427_v24 = vpack.c.bf16 %v133_v16, %v130_v15 }
  0x3a   :  { %v233_v22 = vld [vmem:[%s6557_s1 + $0x458] sm:$0xff]  ;;  %v4491_v25 = vpack.c.bf16 %v229_v19, %v226_v17  ;;  %v4429_v26 = vpack.c.bf16 %v140_v21, %v137_v20  ;;  %v136_v27 = vld [vmem:[%s6557_s1 + $0x150] sm:$0xff]  ;;  %v139_v28 = vld [vmem:[%s6557_s1 + $0x168] sm:$0xff] }
  0x3b   :  { %4420 = vmatpush1.bf16.msra.mxu0 %v4419_v63  ;;  %v232_v29 = vld [vmem:[%s6557_s1 + $0x450] sm:$0xff]  ;;  %v4493_v30 = vpack.c.bf16 %v236_v23, %v233_v22  ;;  %v235_v31 = vld [vmem:[%s6557_s1 + $0x468] sm:$0xff]  ;;  %v146_v33 = vld [vmem:[%s6557_s1 + $0x1a0] sm:$0xff]  ;;  %v4431_v36 = vpack.c.bf16 %v139_v28, %v136_v27 }
  0x3c   :  { %4484 = vmatpush1.bf16.msra.mxu1 %v4483_v1  ;;  %4422 = vmatprep.subr.bf16.mxu0 %v4421_v2  ;;  %v143_v32 = vld [vmem:[%s6557_s1 + $0x188] sm:$0xff]  ;;  %v144_v34 = vld [vmem:[%s6557_s1 + $0x190] sm:$0xff]  ;;  %v4495_v37 = vpack.c.bf16 %v235_v31, %v232_v29  ;;  %v142_v39 = vld [vmem:[%s6557_s1 + $0x180] sm:$0xff] }
  0x3d   :  { %4486 = vmatprep.subr.bf16.mxu1 %v4485_v6  ;;  %v147_v35 = vld [vmem:[%s6557_s1 + $0x1a8] sm:$0xff]  ;;  %v4433_v38 = vpack.c.bf16 %v146_v33, %v143_v32  ;;  %v145_v40 = vld [vmem:[%s6557_s1 + $0x198] sm:$0xff]  ;;  %v152_v42 = vld [vmem:[%s6557_s1 + $0x1d0] sm:$0xff] }
  0x3e   :  { %v149_v41 = vld [vmem:[%s6557_s1 + $0x1b8] sm:$0xff]  ;;  %v4497_v43 = vpack.c.bf16 %v147_v35, %v144_v34  ;;  %v96_v44 = vld [vmem:[%s6557_s1 + $0x10] sm:$0xff]  ;;  %v99_v45 = vld [vmem:[%s6557_s1 + $0x28] sm:$0xff]  ;;  %v4435_v46 = vpack.c.bf16 %v145_v40, %v142_v39 }
  0x3f   :  { %4424 = vmatpush1.bf16.msra.mxu0 %v4423_v12  ;;  %v150_v47 = vld [vmem:[%s6557_s1 + $0x1c0] sm:$0xff]  ;;  %v153_v48 = vld [vmem:[%s6557_s1 + $0x1d8] sm:$0xff]  ;;  %v5405_v49 = vld [vmem:[#allocation2 + $0x10] sm:$0xff]  ;;  %v4437_v50 = vpack.c.bf16 %v152_v42, %v149_v41  ;;  %v4499_v55 = vpack.c.bf16 %v99_v45, %v96_v44 }
  0x40   :  { %4488 = vmatpush1.bf16.msra.mxu1 %v4487_v13  ;;  %4426 = vmatprep.subr.bf16.mxu0 %v4425_v14  ;;  %v148_v51 = vld [vmem:[%s6557_s1 + $0x1b0] sm:$0xff]  ;;  %v151_v52 = vld [vmem:[%s6557_s1 + $0x1c8] sm:$0xff]  ;;  %v158_v54 = vld [vmem:[%s6557_s1 + $0x200] sm:$0xff]  ;;  %v4501_v56 = vpack.c.bf16 %v153_v48, %v150_v47 }
  0x41   :  { %4490 = vmatprep.subr.bf16.mxu1 %v4489_v18  ;;  %v155_v53 = vld [vmem:[%s6557_s1 + $0x1e8] sm:$0xff]  ;;  %v102_v57 = vld [vmem:[%s6557_s1 + $0x40] sm:$0xff]  ;;  %v105_v58 = vld [vmem:[%s6557_s1 + $0x58] sm:$0xff]  ;;  %v4439_v59 = vpack.c.bf16 %v151_v52, %v148_v51 }
  0x42   :  { %v156_v60 = vld [vmem:[%s6557_s1 + $0x1f0] sm:$0xff]  ;;  %v159_v61 = vld [vmem:[%s6557_s1 + $0x208] sm:$0xff]  ;;  %v4441_v63 = vpack.c.bf16 %v158_v54, %v155_v53  ;;  %v154_v1 = vld [vmem:[%s6557_s1 + $0x1e0] sm:$0xff]  ;;  %v4503_v5 = vpack.c.bf16 %v105_v58, %v102_v57 }
  0x43   :  { %4428 = vmatpush1.bf16.msra.mxu0 %v4427_v24  ;;  %v5433_v62 = vld [vmem:[#allocation2 + $0x28] sm:$0xff]  ;;  %v157_v2 = vld [vmem:[%s6557_s1 + $0x1f8] sm:$0xff]  ;;  %v164_v4 = vld [vmem:[%s6557_s1 + $0x230] sm:$0xff]  ;;  %v4505_v6 = vpack.c.bf16 %v159_v61, %v156_v60 }
  0x44   :  { %4492 = vmatpush1.bf16.msra.mxu1 %v4491_v25  ;;  %4430 = vmatprep.subr.bf16.mxu0 %v4429_v26  ;;  %v161_v3 = vld [vmem:[%s6557_s1 + $0x218] sm:$0xff]  ;;  %v108_v7 = vld [vmem:[%s6557_s1 + $0x70] sm:$0xff]  ;;  %v111_v8 = vld [vmem:[%s6557_s1 + $0x88] sm:$0xff]  ;;  %v4443_v9 = vpack.c.bf16 %v157_v2, %v154_v1 }
  0x45   :  { %4494 = vmatprep.subr.bf16.mxu1 %v4493_v30  ;;  %v162_v10 = vld [vmem:[%s6557_s1 + $0x220] sm:$0xff]  ;;  %v165_v11 = vld [vmem:[%s6557_s1 + $0x238] sm:$0xff]  ;;  %v4445_v13 = vpack.c.bf16 %v164_v4, %v161_v3  ;;  %v160_v14 = vld [vmem:[%s6557_s1 + $0x210] sm:$0xff]  ;;  %v4507_v18 = vpack.c.bf16 %v111_v8, %v108_v7 }
  0x46   :  { %v5461_v12 = vld [vmem:[#allocation2 + $0x40] sm:$0xff]  ;;  %v163_v15 = vld [vmem:[%s6557_s1 + $0x228] sm:$0xff]  ;;  %v4509_v20 = vpack.c.bf16 %v165_v11, %v162_v10  ;;  %v117_v22 = vld [vmem:[%s6557_s1 + $0xb8] sm:$0xff] }
  0x47   :  { %4432 = vmatpush1.bf16.msra.mxu0 %v4431_v36  ;;  %v167_v16 = vld [vmem:[%s6557_s1 + $0x248] sm:$0xff]  ;;  %v170_v17 = vld [vmem:[%s6557_s1 + $0x260] sm:$0xff]  ;;  %v4447_v23 = vpack.c.bf16 %v163_v15, %v160_v14  ;;  %v168_v24 = vld [vmem:[%s6557_s1 + $0x250] sm:$0xff] }
  0x48   :  { %4496 = vmatpush1.bf16.msra.mxu1 %v4495_v37  ;;  %4434 = vmatprep.subr.bf16.mxu0 %v4433_v38  ;;  %v5475_v19 = vld [vmem:[#allocation2 + $0x8] sm:$0xff]  ;;  %v114_v21 = vld [vmem:[%s6557_s1 + $0xa0] sm:$0xff]  ;;  %v5492_v26 = vld [vmem:[#allocation2 + $0x58] sm:$0xff]  ;;  %v4449_v27 = vpack.c.bf16 %v170_v17, %v167_v16 }
  0x49   :  { %4498 = vmatprep.subr.bf16.mxu1 %v4497_v43  ;;  %302 = vmatprep.mubr.f32.mxu0 %v5475_v19  ;;  %v171_v25 = vld [vmem:[%s6557_s1 + $0x268] sm:$0xff]  ;;  %v166_v28 = vld [vmem:[%s6557_s1 + $0x240] sm:$0xff]  ;;  %v169_v29 = vld [vmem:[%s6557_s1 + $0x258] sm:$0xff]  ;;  %v4511_v32 = vpack.c.bf16 %v117_v22, %v114_v21 }
  0x4a   :  { %v173_v30 = vld [vmem:[%s6557_s1 + $0x278] sm:$0xff]  ;;  %v176_v31 = vld [vmem:[%s6557_s1 + $0x290] sm:$0xff]  ;;  %v4513_v33 = vpack.c.bf16 %v171_v25, %v168_v24  ;;  %v123_v35 = vld [vmem:[%s6557_s1 + $0xe8] sm:$0xff]  ;;  %v4451_v36 = vpack.c.bf16 %v169_v29, %v166_v28 }
  0x4b   :  { %428 = vmatmul.mubr.f32.vlgmr.msra.gmra.mrb[0].mxu1 %v5405_v49  ;;  %4436 = vmatpush1.bf16.msra.mxu0 %v4435_v46  ;;  %v120_v34 = vld [vmem:[%s6557_s1 + $0xd0] sm:$0xff]  ;;  %v174_v37 = vld [vmem:[%s6557_s1 + $0x280] sm:$0xff]  ;;  %v177_v38 = vld [vmem:[%s6557_s1 + $0x298] sm:$0xff]  ;;  %v4453_v40 = vpack.c.bf16 %v176_v31, %v173_v30 }
  0x4c   :  { %433 = vmatprep.mubr.f32.mxu1 %v5093_v0  ;;  %4438 = vmatprep.subr.bf16.mxu0 %v4437_v50  ;;  %v5520_v39 = vld [vmem:[#allocation2 + $0x70] sm:$0xff]  ;;  %v175_v42 = vld [vmem:[%s6557_s1 + $0x288] sm:$0xff]  ;;  %v182_v44 = vld [vmem:[%s6557_s1 + $0x2c0] sm:$0xff]  ;;  %v4515_v45 = vpack.c.bf16 %v123_v35, %v120_v34  ;;  %v4517_v46 = vpack.c.bf16 %v177_v38, %v174_v37 }
  0x4d   :  { %4500 = vmatpush3.bf16.msra.mxu1 %v4499_v55  ;;  %v172_v41 = vld [vmem:[%s6557_s1 + $0x270] sm:$0xff]  ;;  %v179_v43 = vld [vmem:[%s6557_s1 + $0x2a8] sm:$0xff]  ;;  %v126_v47 = vld [vmem:[%s6557_s1 + $0x100] sm:$0xff] }
  0x4e   :  { %4502 = vmatprep.subr.bf16.mxu1 %v4501_v56  ;;  %v129_v48 = vld [vmem:[%s6557_s1 + $0x118] sm:$0xff]  ;;  %v4455_v50 = vpack.c.bf16 %v175_v42, %v172_v41  ;;  %v180_v51 = vld [vmem:[%s6557_s1 + $0x2b0] sm:$0xff]  ;;  %v183_v52 = vld [vmem:[%s6557_s1 + $0x2c8] sm:$0xff]  ;;  %v4457_v54 = vpack.c.bf16 %v182_v44, %v179_v43 }
  0x4f   :  { %434 = vmatmul.mubr.f32.gmra.mrb[2].mxu1 %v5433_v62  ;;  %4440 = vmatpush1.bf16.msra.mxu0 %v4439_v59  ;;  %v5548_v53 = vld [vmem:[#allocation2 + $0x88] sm:$0xff]  ;;  %v178_v55 = vld [vmem:[%s6557_s1 + $0x2a0] sm:$0xff]  ;;  %v181_v56 = vld [vmem:[%s6557_s1 + $0x2b8] sm:$0xff]  ;;  %v4519_v59 = vpack.c.bf16 %v129_v48, %v126_v47  ;;  %v4521_v60 = vpack.c.bf16 %v183_v52, %v180_v51 }
  0x50   :  { %439 = vmatprep.mubr.f32.mxu1 %v5093_v0  ;;  %4442 = vmatprep.subr.bf16.mxu0 %v4441_v63  ;;  %v185_v57 = vld [vmem:[%s6557_s1 + $0x2d8] sm:$0xff]  ;;  %v188_v58 = vld [vmem:[%s6557_s1 + $0x2f0] sm:$0xff]  ;;  %v135_v63 = vld [vmem:[%s6557_s1 + $0x148] sm:$0xff]  ;;  %v4459_v1 = vpack.c.bf16 %v181_v56, %v178_v55 }
  0x51   :  { %4504 = vmatpush3.bf16.msra.mxu1 %v4503_v5  ;;  %v132_v61 = vld [vmem:[%s6557_s1 + $0x130] sm:$0xff]  ;;  %v186_v2 = vld [vmem:[%s6557_s1 + $0x2e0] sm:$0xff]  ;;  %v189_v3 = vld [vmem:[%s6557_s1 + $0x2f8] sm:$0xff]  ;;  %v4461_v5 = vpack.c.bf16 %v188_v58, %v185_v57 }
  0x52   :  { %4506 = vmatprep.subr.bf16.mxu1 %v4505_v6  ;;  %v5576_v4 = vld [vmem:[#allocation2 + $0xa0] sm:$0xff]  ;;  %v184_v6 = vld [vmem:[%s6557_s1 + $0x2d0] sm:$0xff]  ;;  %v187_v7 = vld [vmem:[%s6557_s1 + $0x2e8] sm:$0xff]  ;;  %v4523_v8 = vpack.c.bf16 %v135_v63, %v132_v61 }
  0x53   :  { %440 = vmatmul.mubr.f32.gmra.mrb[4].mxu1 %v5461_v12  ;;  %4444 = vmatpush1.bf16.msra.mxu0 %v4443_v9  ;;  %v4525_v9 = vpack.c.bf16 %v189_v3, %v186_v2  ;;  %v138_v10 = vld [vmem:[%s6557_s1 + $0x160] sm:$0xff]  ;;  %v141_v11 = vld [vmem:[%s6557_s1 + $0x178] sm:$0xff]  ;;  %v192_v14 = vld [vmem:[%s6557_s1 + $0x310] sm:$0xff] }
  0x54   :  { %445 = vmatprep.mubr.f32.mxu1 %v5093_v0  ;;  %4446 = vmatprep.subr.bf16.mxu0 %v4445_v13  ;;  %v4463_v13 = vpack.c.bf16 %v187_v7, %v184_v6  ;;  %v195_v15 = vld [vmem:[%s6557_s1 + $0x328] sm:$0xff]  ;;  %v5598_v16 = vld [vmem:[#allocation2 + $0xb8] sm:$0xff]  ;;  %v4527_v17 = vpack.c.bf16 %v141_v11, %v138_v10  ;;  %v5602_v21 = vld [vmem:[#allocation2 + $0xd0] sm:$0xff] }
  0x55   :  { %4508 = vmatpush3.bf16.msra.mxu1 %v4507_v18  ;;  %v4529_v18 = vpack.c.bf16 %v195_v15, %v192_v14  ;;  %v68_v22 = vld [vmem:[#allocation2 + $0x20] sm:$0xff]  ;;  %v5606_v24 = vld [vmem:[#allocation2 + $0xe8] sm:$0xff]  ;;  %v71_v25 = vld [vmem:[#allocation2 + $0x38] sm:$0xff] }
  0x56   :  { %4510 = vmatprep.subr.bf16.mxu1 %v4509_v20  ;;  %v64_v20 = vld [vmem:[#allocation2] sm:$0xff]  ;;  %v201_v28 = vld [vmem:[%s6557_s1 + $0x358] sm:$0xff]  ;;  %v70_v29 = vld [vmem:[#allocation2 + $0x30] sm:$0xff] }
  0x57   :  { %446 = vmatmul.mubr.f32.gmra.mrb[6].mxu1 %v5492_v26  ;;  %4448 = vmatpush1.bf16.msra.mxu0 %v4447_v23  ;;  %v67_v23 = vld [vmem:[#allocation2 + $0x18] sm:$0xff]  ;;  %v74_v30 = vld [vmem:[#allocation2 + $0x50] sm:$0xff]  ;;  %v73_v34 = vld [vmem:[#allocation2 + $0x48] sm:$0xff] }
  0x58   :  { %451 = vmatprep.mubr.f32.mxu1 %v5093_v0  ;;  %4450 = vmatprep.subr.bf16.mxu0 %v4449_v27  ;;  %v198_v27 = vld [vmem:[%s6557_s1 + $0x340] sm:$0xff]  ;;  %v77_v35 = vld [vmem:[#allocation2 + $0x68] sm:$0xff]  ;;  %v213_v37 = vld [vmem:[%s6557_s1 + $0x3b8] sm:$0xff] }
  0x59   :  { %4512 = vmatpush3.bf16.msra.mxu1 %v4511_v32  ;;  %v4533_v31 = vpack.c.bf16 %v201_v28, %v198_v27  ;;  %v204_v32 = vld [vmem:[%s6557_s1 + $0x370] sm:$0xff]  ;;  %v76_v38 = vld [vmem:[#allocation2 + $0x60] sm:$0xff]  ;;  %v219_v43 = vld [vmem:[%s6557_s1 + $0x3e8] sm:$0xff] }
  0x5a   :  { %4514 = vmatprep.subr.bf16.mxu1 %v4513_v33  ;;  %v207_v33 = vld [vmem:[%s6557_s1 + $0x388] sm:$0xff]  ;;  %v216_v42 = vld [vmem:[%s6557_s1 + $0x3d0] sm:$0xff]  ;;  %v79_v44 = vld [vmem:[#allocation2 + $0x78] sm:$0xff] }
  0x5b   :  { %452 = vmatmul.mubr.f32.gmra.mrb[8].mxu1 %v5520_v39  ;;  %4452 = vmatpush1.bf16.msra.mxu0 %v4451_v36  ;;  %v4537_v36 = vpack.c.bf16 %v207_v33, %v204_v32  ;;  %v222_v47 = vld [vmem:[%s6557_s1 + $0x400] sm:$0xff]  ;;  %v225_v48 = vld [vmem:[%s6557_s1 + $0x418] sm:$0xff]  ;;  %v86_v51 = vld [vmem:[#allocation2 + $0xb0] sm:$0xff] }
  0x5c   :  { %457 = vmatprep.mubr.f32.mxu1 %v5093_v0  ;;  %4454 = vmatprep.subr.bf16.mxu0 %v4453_v40  ;;  %v80_v40 = vld [vmem:[#allocation2 + $0x80] sm:$0xff]  ;;  %v4549_v52 = vpack.c.bf16 %v225_v48, %v222_v47  ;;  %v231_v55 = vld [vmem:[%s6557_s1 + $0x448] sm:$0xff]  ;;  %v91_v2 = vld [vmem:[#allocation2 + $0xd8] sm:$0xff] }
  0x5d   :  { %4516 = vmatpush3.bf16.msra.mxu1 %v4515_v45  ;;  %v83_v45 = vld [vmem:[#allocation2 + $0x98] sm:$0xff]  ;;  %v85_v56 = vld [vmem:[#allocation2 + $0xa8] sm:$0xff]  ;;  %v88_v61 = vld [vmem:[#allocation2 + $0xc0] sm:$0xff] }
  0x5e   :  { %4518 = vmatprep.subr.bf16.mxu1 %v4517_v46  ;;  %v4545_v46 = vpack.c.bf16 %v219_v43, %v216_v42  ;;  %v89_v57 = vld [vmem:[#allocation2 + $0xc8] sm:$0xff]  ;;  %v92_v63 = vld [vmem:[#allocation2 + $0xe0] sm:$0xff]  ;;  %v1290_v14 = vld [vmem:[%s6560_s4 + $0x38] sm:$0xff] }
  0x5f   :  { %458 = vmatmul.mubr.f32.gmra.mrb[10].mxu1 %v5548_v53  ;;  %4456 = vmatpush1.bf16.msra.mxu0 %v4455_v50  ;;  %v82_v50 = vld [vmem:[#allocation2 + $0x90] sm:$0xff]  ;;  %v1283_v10 = vld [vmem:[%s6560_s4] sm:$0xff]  ;;  %v1314_v47 = vld [vmem:[%s6560_s4 + $0xf8] sm:$0xff] }
  0x60   :  { %463 = vmatprep.mubr.f32.mxu1 %v5093_v0  ;;  %4458 = vmatprep.subr.bf16.mxu0 %v4457_v54  ;;  %v228_v54 = vld [vmem:[%s6557_s1 + $0x430] sm:$0xff]  ;;  %v1295_v28 = vld [vmem:[%s6560_s4 + $0x60] sm:$0xff] }
  0x61   :  { %4520 = vmatpush3.bf16.msra.mxu1 %v4519_v59  ;;  %v4553_v58 = vpack.c.bf16 %v231_v55, %v228_v54  ;;  %v234_v59 = vld [vmem:[%s6557_s1 + $0x460] sm:$0xff]  ;;  %v1293_v15 = vld [vmem:[%s6560_s4 + $0x50] sm:$0xff] }
  0x62   :  { %4522 = vmatprep.subr.bf16.mxu1 %v4521_v60  ;;  %v237_v60 = vld [vmem:[%s6557_s1 + $0x478] sm:$0xff]  ;;  %v1317_v48 = vld [vmem:[%s6560_s4 + $0x110] sm:$0xff] }
  0x63   :  { %464 = vmatmul.mubr.f32.gmra.mrb[12].mxu1 %v5576_v4  ;;  %4460 = vmatpush1.bf16.msra.mxu0 %v4459_v1  ;;  %v4557_v1 = vpack.c.bf16 %v237_v60, %v234_v59  ;;  %v1316_v59 = vld [vmem:[%s6560_s4 + $0x108] sm:$0xff] }
  0x64   :  { %469 = vmatprep.mubr.f32.mxu1 %v5093_v0  ;;  %4462 = vmatprep.subr.bf16.mxu0 %v4461_v5 }
  0x65   :  { %4524 = vmatpush3.bf16.msra.mxu1 %v4523_v8  ;;  %v1284_v8 = vld [vmem:[%s6560_s4 + $0x8] sm:$0xff] }
  0x66   :  { %4526 = vmatprep.subr.bf16.mxu1 %v4525_v9  ;;  %v1287_v9 = vld [vmem:[%s6560_s4 + $0x20] sm:$0xff] }
  0x67   :  { %470 = vmatmul.mubr.f32.gmra.mrb[14].mxu1 %v5598_v16  ;;  %4464 = vmatpush1.bf16.msra.mxu0 %v4463_v13  ;;  %v4621_v11 = vpack.c.bf16 %v1287_v9, %v1284_v8  ;;  %v1286_v13 = vld [vmem:[%s6560_s4 + $0x18] sm:$0xff] }
  0x68   :  { %475 = vmatprep.mubr.f32.mxu1 %v5093_v0 }
  0x69   :  { %4528 = vmatpush3.bf16.msra.mxu1 %v4527_v17  ;;  %v4625_v17 = vpack.c.bf16 %v1293_v15, %v1290_v14  ;;  %4622 = vmatprep.subr.bf16.mxu0 %v4621_v11  ;;  %v1319_v11 = vld [vmem:[%s6560_s4 + $0x120] sm:$0xff] }
  0x6a   :  { %303 = vmatmul.mubr.f32.vlgmr.msra.gmra.mrb[0].mxu0 %v64_v20  ;;  %4530 = vmatprep.subr.bf16.mxu1 %v4529_v18 }
  0x6b   :  { %476 = vmatmul.mubr.f32.gmra.mrb[16].mxu1 %v5602_v21  ;;  %308 = vmatprep.mubr.f32.mxu0 %v68_v22 }
  0x6c   :  { %481 = vmatprep.mubr.f32.mxu1 %v5093_v0 }
  0x6e   :  { %309 = vmatmul.mubr.f32.gmra.mrb[2].mxu0 %v67_v23 }
  0x6f   :  { %482 = vmatmul.mubr.f32.gmra.mrb[18].mxu1 %v5606_v24  ;;  %314 = vmatprep.mubr.f32.mxu0 %v71_v25 }
  0x70   :  { %552 = vmatprep.mubr.f32.mxu1 %v5475_v19  ;;  %v210_v19 = vld [vmem:[%s6557_s1 + $0x3a0] sm:$0xff] }
  0x71   :  { %v4541_v41 = vpack.c.bf16 %v213_v37, %v210_v19  ;;  %v1304_v19 = vld [vmem:[%s6560_s4 + $0xa8] sm:$0xff] }
  0x72   :  { %315 = vmatmul.mubr.f32.gmra.mrb[4].mxu0 %v70_v29  ;;  %v1308_v37 = vld [vmem:[%s6560_s4 + $0xc8] sm:$0xff] }
  0x73   :  { %553 = vmatmul.mubr.f32.vlgmr.msra.gmra.mrb[20].mxu1 %v64_v20  ;;  %320 = vmatprep.mubr.f32.mxu0 %v74_v30 }
  0x74   :  { %557 = vmatprep.mubr.f32.mxu1 %v68_v22  ;;  %4532 = vmatpush3.bf16.msra.mxu1 %v4529_v18  ;;  %v1289_v18 = vld [vmem:[%s6560_s4 + $0x30] sm:$0xff] }
  0x75   :  { %4534 = vmatprep.subr.bf16.mxu1 %v4533_v31 }
  0x76   :  { %321 = vmatmul.mubr.f32.gmra.mrb[6].mxu0 %v73_v34 }
  0x77   :  { %558 = vmatmul.mubr.f32.gmra.mrb[22].mxu1 %v67_v23  ;;  %326 = vmatprep.mubr.f32.mxu0 %v77_v35 }
  0x78   :  { %562 = vmatprep.mubr.f32.mxu1 %v71_v25  ;;  %4536 = vmatpush3.bf16.msra.mxu1 %v4533_v31  ;;  %v1299_v25 = vld [vmem:[%s6560_s4 + $0x80] sm:$0xff]  ;;  %v1305_v31 = vld [vmem:[%s6560_s4 + $0xb0] sm:$0xff] }
  0x79   :  { %4538 = vmatprep.subr.bf16.mxu1 %v4537_v36 }
  0x7a   :  { %327 = vmatmul.mubr.f32.gmra.mrb[8].mxu0 %v76_v38 }
  0x7b   :  { %563 = vmatmul.mubr.f32.gmra.mrb[24].mxu1 %v70_v29  ;;  %332 = vmatprep.mubr.f32.mxu0 %v80_v40  ;;  %v1298_v29 = vld [vmem:[%s6560_s4 + $0x78] sm:$0xff] }
  0x7c   :  { %567 = vmatprep.mubr.f32.mxu1 %v74_v30  ;;  %4540 = vmatpush3.bf16.msra.mxu1 %v4537_v36  ;;  %v1302_v30 = vld [vmem:[%s6560_s4 + $0x98] sm:$0xff]  ;;  %v1301_v36 = vld [vmem:[%s6560_s4 + $0x90] sm:$0xff] }
  0x7d   :  { %4542 = vmatprep.subr.bf16.mxu1 %v4541_v41  ;;  %v4635_v42 = vpack.c.bf16 %v1304_v19, %v1301_v36 }
  0x7e   :  { %333 = vmatmul.mubr.f32.gmra.mrb[10].mxu0 %v79_v44 }
  0x7f   :  { %568 = vmatmul.mubr.f32.gmra.mrb[26].mxu1 %v73_v34  ;;  %338 = vmatprep.mubr.f32.mxu0 %v83_v45  ;;  %v4631_v34 = vpack.c.bf16 %v1298_v29, %v1295_v28 }
  0x80   :  { %572 = vmatprep.mubr.f32.mxu1 %v77_v35  ;;  %4544 = vmatpush3.bf16.msra.mxu1 %v4541_v41  ;;  %v4633_v35 = vpack.c.bf16 %v1305_v31, %v1302_v30 }
  0x81   :  { %4546 = vmatprep.subr.bf16.mxu1 %v4545_v46 }
  0x82   :  { %339 = vmatmul.mubr.f32.gmra.mrb[12].mxu0 %v82_v50 }
  0x83   :  { %573 = vmatmul.mubr.f32.gmra.mrb[28].mxu1 %v76_v38  ;;  %344 = vmatprep.mubr.f32.mxu0 %v86_v51  ;;  %v1311_v38 = vld [vmem:[%s6560_s4 + $0xe0] sm:$0xff] }
  0x84   :  { %577 = vmatprep.mubr.f32.mxu1 %v80_v40  ;;  %4548 = vmatpush3.bf16.msra.mxu1 %v4545_v46  ;;  %v4637_v43 = vpack.c.bf16 %v1311_v38, %v1308_v37 }
  0x85   :  { %4550 = vmatprep.subr.bf16.mxu1 %v4549_v52 }
  0x86   :  { %345 = vmatmul.mubr.f32.gmra.mrb[14].mxu0 %v85_v56 }
  0x87   :  { %578 = vmatmul.mubr.f32.gmra.mrb[30].mxu1 %v79_v44  ;;  %350 = vmatprep.mubr.f32.mxu0 %v89_v57  ;;  %v1307_v44 = vld [vmem:[%s6560_s4 + $0xc0] sm:$0xff] }
  0x88   :  { %582 = vmatprep.mubr.f32.mxu1 %v83_v45  ;;  %4552 = vmatpush3.bf16.msra.mxu1 %v4549_v52  ;;  %v1310_v45 = vld [vmem:[%s6560_s4 + $0xd8] sm:$0xff] }
  0x89   :  { %4554 = vmatprep.subr.bf16.mxu1 %v4553_v58 }
  0x8a   :  { %351 = vmatmul.mubr.f32.gmra.mrb[16].mxu0 %v88_v61 }
  0x8b   :  { %583 = vmatmul.mubr.f32.gmra.mrb[32].mxu1 %v82_v50  ;;  %356 = vmatprep.mubr.f32.mxu0 %v92_v63 }
  0x8c   :  { %587 = vmatprep.mubr.f32.mxu1 %v86_v51  ;;  %4556 = vmatpush3.bf16.msra.mxu1 %v4553_v58  ;;  %v1313_v58 = vld [vmem:[%s6560_s4 + $0xf0] sm:$0xff] }
  0x8d   :  { %4558 = vmatprep.subr.bf16.mxu1 %v4557_v1  ;;  %v4643_v8 = vpack.c.bf16 %v1316_v59, %v1313_v58 }
  0x8e   :  { %357 = vmatmul.mubr.f32.gmra.mrb[18].mxu0 %v91_v2 }
  0x8f   :  { %588 = vmatmul.mubr.f32.gmra.mrb[34].mxu1 %v85_v56  ;;  %1395 = vmatprep.mubr.f32.mxu0 %v5093_v0  ;;  %v4639_v56 = vpack.c.bf16 %v1310_v45, %v1307_v44 }
  0x90   :  { %592 = vmatprep.mubr.f32.mxu1 %v89_v57  ;;  %4560 = vmatpush3.bf16.msra.mxu1 %v4557_v1  ;;  %v4641_v57 = vpack.c.bf16 %v1317_v48, %v1314_v47 }
  0x93   :  { %593 = vmatmul.mubr.f32.gmra.mrb[36].mxu1 %v88_v61  ;;  %v1320_v61 = vld [vmem:[%s6560_s4 + $0x128] sm:$0xff] }
  0x94   :  { %597 = vmatprep.mubr.f32.mxu1 %v92_v63  ;;  %v1323_v63 = vld [vmem:[%s6560_s4 + $0x140] sm:$0xff] }
  0x97   :  { %598 = vmatmul.mubr.f32.gmra.mrb[38].mxu1 %v91_v2 }
  0x98   :  { %3878 = vmatprep.mubr.f32.mxu1 %v5405_v49  ;;  %v3253_v49 = vld [vmem:[%s6558_s2 + $0x60] sm:$0xff] }
  0x9b   :  { %3879 = vmatmul.mubr.f32.vlgmr.msra.gmra.mrb[40].mxu1 %v5433_v62 }
  0x9c   :  { %3881 = vmatprep.mubr.f32.mxu1 %v5461_v12 }
  0x9f   :  { %3882 = vmatmul.mubr.f32.gmra.mrb[42].mxu1 %v5492_v26 }
  0xa0   :  { %3884 = vmatprep.mubr.f32.mxu1 %v5520_v39 }
  0xa3   :  { %3885 = vmatmul.mubr.f32.gmra.mrb[44].mxu1 %v5548_v53 }
  0xa4   :  { %3887 = vmatprep.mubr.f32.mxu1 %v5576_v4 }
  0xa7   :  { %3888 = vmatmul.mubr.f32.gmra.mrb[46].mxu1 %v5598_v16  ;;  %v4623_v16 = vpack.c.bf16 %v1286_v13, %v1283_v10  ;;  %v4645_v10 = vpack.c.bf16 %v1323_v63, %v1320_v61 }
  0xa8   :  { %3890 = vmatprep.mubr.f32.mxu1 %v5602_v21  ;;  %v1292_v21 = vld [vmem:[%s6560_s4 + $0x48] sm:$0xff] }
  0xa9   :  { %4624 = vmatpush1.bf16.msra.mxu0 %v4623_v16  ;;  %v4627_v23 = vpack.c.bf16 %v1292_v21, %v1289_v18 }
  0xaa   :  { %4626 = vmatprep.subr.bf16.mxu0 %v4625_v17 }
  0xab   :  { %3891 = vmatmul.mubr.f32.gmra.mrb[48].mxu1 %v5606_v24  ;;  %v1296_v24 = vld [vmem:[%s6560_s4 + $0x68] sm:$0xff] }
  0xac   :  { %3913 = vmatprep.mubr.msk.f32.mxu1 %vm743_vm0, %v3253_v49  ;;  %v4629_v27 = vpack.c.bf16 %v1299_v25, %v1296_v24 }
  0xad   :  { %4628 = vmatpush1.bf16.msra.mxu0 %v4627_v23 }
  0xae   :  { %4630 = vmatprep.subr.bf16.mxu0 %v4629_v27 }
  0xb1   :  { %4632 = vmatpush1.bf16.msra.mxu0 %v4631_v34 }
  0xb2   :  { %4634 = vmatprep.subr.bf16.mxu0 %v4633_v35 }
  0xb5   :  { %4636 = vmatpush1.bf16.msra.mxu0 %v4635_v42 }
  0xb6   :  { %4638 = vmatprep.subr.bf16.mxu0 %v4637_v43 }
  0xb9   :  { %4640 = vmatpush1.bf16.msra.mxu0 %v4639_v56 }
  0xba   :  { %4642 = vmatprep.subr.bf16.mxu0 %v4641_v57 }
  0xbd   :  { %4644 = vmatpush1.bf16.msra.mxu0 %v4643_v8 }
  0xbe   :  { %4646 = vmatprep.subr.bf16.mxu0 %v4645_v10 }
 0x11e   :  { %v429_v62 = vpop.f32.mrb[0].mxu1 }
 0x11f   :  { %v431_v12 = vpop.f32.mrb[1].mxu1 }
 0x122   :  { %v5667_v26 = vpop.f32.mrb[2].mxu1 }
 0x123   :  { %v5669_v39 = vpop.f32.mrb[3].mxu1 }
 0x126   :  { %v5671_v53 = vpop.f32.mrb[4].mxu1 }
 0x127   :  { %v5673_v3 = vpop.f32.mrb[5].mxu1 }
 0x12a   :  { %v5675_v4 = vpop.f32.mrb[6].mxu1 }
 0x12b   :  { %v5677_v5 = vpop.f32.mrb[7].mxu1 }
 0x12e   :  { %v5679_v6 = vpop.f32.mrb[8].mxu1 }
 0x12f   :  { %v5681_v7 = vpop.f32.mrb[9].mxu1 }
 0x132   :  { %v5704_v20 = vpop.f32.mrb[10].mxu1 }
 0x133   :  { %v5709_v22 = vpop.f32.mrb[11].mxu1 }
 0x136   :  { %v5729_v32 = vpop.f32.mrb[12].mxu1 }
 0x137   :  { %v5731_v33 = vpop.f32.mrb[13].mxu1 }
 0x13a   :  { %v5745_v40 = vpop.f32.mrb[14].mxu1 }
 0x13b   :  { %v5747_v41 = vpop.f32.mrb[15].mxu1 }
 0x13d   :  { %v304_v46 = vpop.f32.mrb[0].mxu0 }
 0x13e   :  { %v430_v50 = vadd.f32 %v429_v62, %v304_v46  ;;  %v306_v51 = vpop.f32.mrb[1].mxu0  ;;  %v5761_v52 = vpop.f32.mrb[16].mxu1 }
 0x13f   :  { %v432_v54 = vadd.f32 %v431_v12, %v306_v51  ;;  %v5763_v55 = vpop.f32.mrb[17].mxu1 }
 0x141   :  { %v310_v60 = vpop.f32.mrb[2].mxu0 }
 0x142   :  { %v436_v1 = vadd.f32 %v5667_v26, %v310_v60  ;;  %v312_v2 = vpop.f32.mrb[3].mxu0  ;;  %v5778_v49 = vpop.f32.mrb[18].mxu1  ;;  %v1322_v26 = vld [vmem:[%s6560_s4 + $0x138] sm:$0xff] }
 0x143   :  { %v438_v62 = vadd.f32 %v5669_v39, %v312_v2  ;;  %v5781_v12 = vpop.f32.mrb[19].mxu1  ;;  %v4647_v21 = vpack.c.bf16 %v1322_v26, %v1319_v11 }
 0x144   :  { %v5783_v9 = vpack.c.bf16 %v436_v1, %v430_v50 }
 0x145   :  { %v4561_v13 = vpack.c.bf16 %v438_v62, %v432_v54  ;;  %v316_v14 = vpop.f32.mrb[4].mxu0  ;;  %4648 = vmatpush1.bf16.msra.mxu0 %v4647_v21 }
 0x146   :  { %v442_v39 = vadd.f32 %v5671_v53, %v316_v14  ;;  %v318_v15 = vpop.f32.mrb[5].mxu0  ;;  %v3498_v16 = vpop.f32.mrb[20].mxu1 }
 0x147   :  { %v444_v17 = vadd.f32 %v5673_v3, %v318_v15  ;;  %4562 = vmatprep.subr.bf16.mxu1 %v4561_v13  ;;  %v3499_v18 = vpop.f32.mrb[21].mxu1 }
 0x148   :  { %4564 = vmatpush3.bf16.msra.mxu1 %v4561_v13  ;;  %v5793_v23 = vadd.f32 %v3499_v18, %v3498_v16 }
 0x149   :  { %v322_v24 = vpop.f32.mrb[6].mxu0 }
 0x14a   :  { %v448_v25 = vadd.f32 %v5675_v4, %v322_v24  ;;  %v324_v27 = vpop.f32.mrb[7].mxu0  ;;  %v3501_v28 = vpop.f32.mrb[22].mxu1 }
 0x14b   :  { %v450_v29 = vadd.f32 %v5677_v5, %v324_v27  ;;  %v3502_v53 = vpop.f32.mrb[23].mxu1 }
 0x14c   :  { %v5797_v30 = vpack.c.bf16 %v448_v25, %v442_v39  ;;  %v5799_v3 = vadd.f32 %v3502_v53, %v3501_v28  ;;  %v3254_v25 = vld [vmem:[%s6558_s2 + $0x68] sm:$0xff]  ;;  %v3257_v53 = vld [vmem:[%s6558_s2 + $0x80] sm:$0xff] }
 0x14d   :  { %v4565_v31 = vpack.c.bf16 %v450_v29, %v444_v17  ;;  %v328_v34 = vpop.f32.mrb[8].mxu0  ;;  %v3256_v29 = vld [vmem:[%s6558_s2 + $0x78] sm:$0xff] }
 0x14e   :  { %v454_v35 = vadd.f32 %v5679_v6, %v328_v34  ;;  %v330_v36 = vpop.f32.mrb[9].mxu0  ;;  %v3504_v19 = vpop.f32.mrb[24].mxu1 }
 0x14f   :  { %v456_v37 = vadd.f32 %v5681_v7, %v330_v36  ;;  %4566 = vmatprep.subr.bf16.mxu1 %v4565_v31  ;;  %v3505_v4 = vpop.f32.mrb[25].mxu1  ;;  %v3258_v36 = vld [vmem:[%s6558_s2 + $0x88] sm:$0xff] }
 0x150   :  { %4568 = vmatpush3.bf16.msra.mxu1 %v4565_v31  ;;  %v5803_v38 = vadd.f32 %v3505_v4, %v3504_v19  ;;  %v3259_v19 = vld [vmem:[%s6558_s2 + $0x90] sm:$0xff] }
 0x151   :  { %v334_v5 = vpop.f32.mrb[10].mxu0 }
 0x152   :  { %v460_v42 = vadd.f32 %v5704_v20, %v334_v5  ;;  %v336_v43 = vpop.f32.mrb[11].mxu0  ;;  %v3507_v44 = vpop.f32.mrb[26].mxu1 }
 0x153   :  { %v462_v45 = vadd.f32 %v5709_v22, %v336_v43  ;;  %v3508_v46 = vpop.f32.mrb[27].mxu1 }
 0x154   :  { %v5807_v47 = vpack.c.bf16 %v460_v42, %v454_v35  ;;  %v5809_v6 = vadd.f32 %v3508_v46, %v3507_v44  ;;  %v3261_v42 = vld [vmem:[%s6558_s2 + $0xa0] sm:$0xff] }
 0x155   :  { %v4569_v48 = vpack.c.bf16 %v462_v45, %v456_v37  ;;  %v340_v50 = vpop.f32.mrb[12].mxu0 }
 0x156   :  { %v466_v7 = vadd.f32 %v5729_v32, %v340_v50  ;;  %v342_v51 = vpop.f32.mrb[13].mxu0  ;;  %v3510_v54 = vpop.f32.mrb[28].mxu1 }
 0x157   :  { %v468_v56 = vadd.f32 %v5731_v33, %v342_v51  ;;  %4570 = vmatprep.subr.bf16.mxu1 %v4569_v48  ;;  %v3511_v57 = vpop.f32.mrb[29].mxu1 }
 0x158   :  { %4572 = vmatpush3.bf16.msra.mxu1 %v4569_v48  ;;  %v5813_v20 = vadd.f32 %v3511_v57, %v3510_v54  ;;  %v718_v57 = vld [vmem:[%s6558_s2] sm:$0xff] }
 0x159   :  { %v346_v58 = vpop.f32.mrb[14].mxu0 }
 0x15a   :  { %v472_v22 = vadd.f32 %v5745_v40, %v346_v58  ;;  %v348_v59 = vpop.f32.mrb[15].mxu0  ;;  %v3513_v60 = vpop.f32.mrb[30].mxu1 }
 0x15b   :  { %v474_v61 = vadd.f32 %v5747_v41, %v348_v59  ;;  %v3514_v63 = vpop.f32.mrb[31].mxu1 }
 0x15c   :  { %v5817_v1 = vpack.c.bf16 %v472_v22, %v466_v7  ;;  %v3515_v32 = vadd.f32 %v3514_v63, %v3513_v60  ;;  %v720_v63 = vld [vmem:[%s6558_s2 + $0x10] sm:$0xff] }
 0x15d   :  { %v4573_v2 = vpack.c.bf16 %v474_v61, %v468_v56  ;;  %v352_v62 = vpop.f32.mrb[16].mxu0  ;;  %v3264_v56 = vld [vmem:[%s6558_s2 + $0xb8] sm:$0xff]  ;;  %v719_v61 = vld [vmem:[%s6558_s2 + $0x8] sm:$0xff] }
 0x15e   :  { %v478_v33 = vadd.f32 %v5761_v52, %v352_v62  ;;  %v354_v8 = vpop.f32.mrb[17].mxu0  ;;  %v3516_v10 = vpop.f32.mrb[32].mxu1  ;;  %v723_v62 = vld [vmem:[%s6558_s2 + $0x28] sm:$0xff] }
 0x15f   :  { %v480_v11 = vadd.f32 %v5763_v55, %v354_v8  ;;  %4574 = vmatprep.subr.bf16.mxu1 %v4573_v2  ;;  %v3517_v26 = vpop.f32.mrb[33].mxu1  ;;  %v725_v8 = vld [vmem:[%s6558_s2 + $0x38] sm:$0xff] }
 0x160   :  { %4576 = vmatpush3.bf16.msra.mxu1 %v4573_v2  ;;  %v5821_v40 = vadd.f32 %v3517_v26, %v3516_v10  ;;  %v722_v2 = vld [vmem:[%s6558_s2 + $0x20] sm:$0xff]  ;;  %v1288_v26 = vld [vmem:[%s6560_s4 + $0x28] sm:$0xff] }
 0x161   :  { %v358_v13 = vpop.f32.mrb[18].mxu0  ;;  %v726_v10 = vld [vmem:[%s6558_s2 + $0x40] sm:$0xff] }
 0x162   :  { %v484_v41 = vadd.f32 %v5778_v49, %v358_v13  ;;  %v360_v14 = vpop.f32.mrb[19].mxu0  ;;  %v3519_v39 = vpop.f32.mrb[34].mxu1  ;;  %v3255_v49 = vld [vmem:[%s6558_s2 + $0x70] sm:$0xff] }
 0x163   :  { %v486_v15 = vadd.f32 %v5781_v12, %v360_v14  ;;  %v3520_v16 = vpop.f32.mrb[35].mxu1  ;;  %v728_v13 = vld [vmem:[%s6558_s2 + $0x50] sm:$0xff]  ;;  %v729_v14 = vld [vmem:[%s6558_s2 + $0x58] sm:$0xff] }
 0x164   :  { %v4597_v17 = vpack.c.bf16 %v484_v41, %v478_v33  ;;  %v3521_v18 = vadd.f32 %v3520_v16, %v3519_v39  ;;  %v724_v33 = vld [vmem:[%s6558_s2 + $0x30] sm:$0xff]  ;;  %v3289_v39 = vld [vmem:[%s6558_s2 + $0xc0] sm:$0xff]  ;;  %v1294_v16 = vld [vmem:[%s6560_s4 + $0x58] sm:$0xff] }
 0x165   :  { %v4577_v52 = vpack.c.bf16 %v486_v15, %v480_v11  ;;  %v1285_v11 = vld [vmem:[%s6560_s4 + $0x10] sm:$0xff]  ;;  %v1291_v15 = vld [vmem:[%s6560_s4 + $0x40] sm:$0xff] }
 0x166   :  { %v3522_v21 = vpop.f32.mrb[36].mxu1  ;;  %v4653_v41 = vpack.c.bf16 %v1288_v26, %v1285_v11 }
 0x167   :  { %4578 = vmatprep.subr.bf16.mxu1 %v4577_v52  ;;  %v3523_v24 = vpop.f32.mrb[37].mxu1 }
 0x168   :  { %4580 = vmatpush3.bf16.msra.mxu1 %v4577_v52  ;;  %v3524_v55 = vadd.f32 %v3523_v24, %v3522_v21  ;;  %v4657_v52 = vpack.c.bf16 %v1294_v16, %v1291_v15  ;;  %v1297_v21 = vld [vmem:[%s6560_s4 + $0x70] sm:$0xff]  ;;  %v1300_v24 = vld [vmem:[%s6560_s4 + $0x88] sm:$0xff] }
 0x169   :  { %4582 = vmatprep.subr.bf16.mxu1 %v5783_v9 }
 0x16a   :  { %v3525_v12 = vpop.f32.mrb[38].mxu1 }
 0x16b   :  { %3914 = vmatmul.mubr.msk.f32.vlgmr.msra.gmra.mrb[50].mxu1 %vm743_vm0, %v3254_v25  ;;  %v3526_v27 = vpop.f32.mrb[39].mxu1  ;;  %v3293_v25 = vld [vmem:[%s6558_s2 + $0xe0] sm:$0xff] }
 0x16c   :  { %v3527_v28 = vadd.f32 %v3526_v27, %v3525_v12  ;;  %4584 = vmatpush3.bf16.msra.mxu1 %v5783_v9  ;;  %3916 = vmatprep.mubr.msk.f32.mxu1 %vm743_vm0, %v3255_v49  ;;  %v4661_v49 = vpack.c.bf16 %v1300_v24, %v1297_v21  ;;  %v1303_v12 = vld [vmem:[%s6560_s4 + $0xa0] sm:$0xff]  ;;  %v1306_v27 = vld [vmem:[%s6560_s4 + $0xb8] sm:$0xff] }
 0x16d   :  { %4586 = vmatprep.subr.bf16.mxu1 %v5797_v30 }
 0x16e   :  { %v3880_v31 = vpop.f32.mrb[40].mxu1 }
 0x16f   :  { %v675_v34 = vadd.f32 %v3880_v31, %v5799_v3  ;;  %v669_v35 = vpop.f32.mrb[41].mxu1  ;;  %3917 = vmatmul.mubr.msk.f32.gmra.mrb[52].mxu1 %vm743_vm0, %v3256_v29  ;;  %v3295_v29 = vld [vmem:[%s6558_s2 + $0xf0] sm:$0xff] }
 0x170   :  { %v670_v9 = vadd.f32 %v5793_v23, %v669_v35  ;;  %4588 = vmatpush3.bf16.msra.mxu1 %v5797_v30  ;;  %3919 = vmatprep.mubr.msk.f32.mxu1 %vm743_vm0, %v3257_v53  ;;  %v3260_v30 = vld [vmem:[%s6558_s2 + $0x98] sm:$0xff]  ;;  %v4665_v53 = vpack.c.bf16 %v1306_v27, %v1303_v12  ;;  %v1309_v31 = vld [vmem:[%s6560_s4 + $0xd0] sm:$0xff] }
 0x171   :  { %4590 = vmatprep.subr.bf16.mxu1 %v5807_v47  ;;  %v3296_v35 = vld [vmem:[%s6558_s2 + $0xf8] sm:$0xff] }
 0x172   :  { %v4601_v3 = vpack.c.bf16 %v675_v34, %v670_v9  ;;  %v3883_v37 = vpop.f32.mrb[42].mxu1  ;;  %v1312_v34 = vld [vmem:[%s6560_s4 + $0xe8] sm:$0xff]  ;;  %v3297_v9 = vld [vmem:[%s6558_s2 + $0x100] sm:$0xff] }
 0x173   :  { %v685_v4 = vadd.f32 %v3883_v37, %v5809_v6  ;;  %v679_v5 = vpop.f32.mrb[43].mxu1  ;;  %3920 = vmatmul.mubr.msk.f32.gmra.mrb[54].mxu1 %vm743_vm0, %v3258_v36  ;;  %v3263_v6 = vld [vmem:[%s6558_s2 + $0xb0] sm:$0xff]  ;;  %v4669_v36 = vpack.c.bf16 %v1312_v34, %v1309_v31  ;;  %v3298_v37 = vld [vmem:[%s6558_s2 + $0x108] sm:$0xff] }
 0x174   :  { %v680_v23 = vadd.f32 %v5803_v38, %v679_v5  ;;  %4592 = vmatpush3.bf16.msra.mxu1 %v5807_v47  ;;  %3922 = vmatprep.mubr.msk.f32.mxu1 %vm743_vm0, %v3259_v19  ;;  %v3262_v47 = vld [vmem:[%s6558_s2 + $0xa8] sm:$0xff]  ;;  %v1315_v19 = vld [vmem:[%s6560_s4 + $0x100] sm:$0xff] }
 0x175   :  { %4594 = vmatprep.subr.bf16.mxu1 %v5817_v1 }
 0x176   :  { %v4605_v43 = vpack.c.bf16 %v685_v4, %v680_v23  ;;  %v3886_v44 = vpop.f32.mrb[44].mxu1  ;;  %v3299_v4 = vld [vmem:[%s6558_s2 + $0x110] sm:$0xff] }
 0x177   :  { %v695_v45 = vadd.f32 %v3886_v44, %v3515_v32  ;;  %v689_v46 = vpop.f32.mrb[45].mxu1  ;;  %3923 = vmatmul.mubr.msk.f32.gmra.mrb[56].mxu1 %vm743_vm0, %v3260_v30  ;;  %v721_v32 = vld [vmem:[%s6558_s2 + $0x18] sm:$0xff]  ;;  %v1321_v23 = vld [vmem:[%s6560_s4 + $0x130] sm:$0xff]  ;;  %v1324_v30 = vld [vmem:[%s6560_s4 + $0x148] sm:$0xff] }
 0x178   :  { %v690_v38 = vadd.f32 %v5813_v20, %v689_v46  ;;  %4596 = vmatpush3.bf16.msra.mxu1 %v5817_v1  ;;  %3925 = vmatprep.mubr.msk.f32.mxu1 %vm743_vm0, %v3261_v42  ;;  %v3300_v42 = vld [vmem:[%s6558_s2 + $0x118] sm:$0xff] }
 0x179   :  { %4598 = vmatprep.subr.bf16.mxu1 %v4597_v17  ;;  %v1326_v44 = vld [vmem:[%s6560_s4 + $0x158] sm:$0xff] }
 0x17a   :  { %v4609_v48 = vpack.c.bf16 %v695_v45, %v690_v38  ;;  %v3889_v50 = vpop.f32.mrb[46].mxu1  ;;  %v1329_v45 = vld [vmem:[%s6560_s4 + $0x170] sm:$0xff] }
 0x17b   :  { %v705_v7 = vadd.f32 %v3889_v50, %v3521_v18  ;;  %v699_v51 = vpop.f32.mrb[47].mxu1  ;;  %3926 = vmatmul.mubr.msk.f32.gmra.mrb[58].mxu1 %vm743_vm0, %v3262_v47  ;;  %v3291_v18 = vld [vmem:[%s6558_s2 + $0xd0] sm:$0xff]  ;;  %v4649_v46 = vpack.c.bf16 %v1329_v45, %v1326_v44  ;;  %v1328_v47 = vld [vmem:[%s6560_s4 + $0x168] sm:$0xff]  ;;  %v1330_v50 = vld [vmem:[%s6560_s4 + $0x178] sm:$0xff] }
 0x17c   :  { %v700_v54 = vadd.f32 %v5821_v40, %v699_v51  ;;  %4600 = vmatpush3.bf16.msra.mxu1 %v4597_v17  ;;  %3928 = vmatprep.mubr.msk.f32.mxu1 %vm743_vm0, %v3263_v6  ;;  %v727_v40 = vld [vmem:[%s6558_s2 + $0x48] sm:$0xff]  ;;  %v1325_v38 = vld [vmem:[%s6560_s4 + $0x150] sm:$0xff]  ;;  %v1327_v6 = vld [vmem:[%s6560_s4 + $0x160] sm:$0xff] }
 0x17d   :  { %4602 = vmatprep.subr.bf16.mxu1 %v4601_v3  ;;  %v3290_v17 = vld [vmem:[%s6558_s2 + $0xc8] sm:$0xff]  ;;  %4650 = vmatprep.subr.bf16.mxu0 %v4649_v46  ;;  %v3313_v51 = vld [vmem:[%s6559_s3] ss:$0 sm:$0xff] }
 0x17e   :  { %v4613_v20 = vpack.c.bf16 %v705_v7, %v700_v54  ;;  %v3892_v58 = vpop.f32.mrb[48].mxu1  ;;  %v4681_v7 = vpack.c.bf16 %v1330_v50, %v1327_v6  ;;  %v2227_v6 = vld [vmem:[#allocation5 + $0x48] sm:$0xff] }
 0x17f   :  { %v715_v22 = vadd.f32 %v3892_v58, %v3527_v28  ;;  %v709_v59 = vpop.f32.mrb[49].mxu1  ;;  %3929 = vmatmul.mubr.msk.f32.gmra.mrb[60].mxu1 %vm743_vm0, %v3264_v56  ;;  %v3294_v28 = vld [vmem:[%s6558_s2 + $0xe8] sm:$0xff] }
 0x180   :  { %v710_v60 = vadd.f32 %v3524_v55, %v709_v59  ;;  %3951 = vmatprep.mubr.msk.f32.mxu1 %vm743_vm0, %v718_v57  ;;  %v3292_v55 = vld [vmem:[%s6558_s2 + $0xd8] sm:$0xff] }
 0x182   :  { %v4617_v1 = vpack.c.bf16 %v715_v22, %v710_v60 }
 0x183   :  { %3952 = vmatmul.mubr.msk.f32.vlgmr.msra.gmra.mrb[50].mxu1 %vm743_vm0, %v719_v61 }
 0x184   :  { %4604 = vmatpush3.bf16.msra.mxu1 %v4601_v3  ;;  %3954 = vmatprep.mubr.msk.f32.mxu1 %vm743_vm0, %v720_v63  ;;  %v1318_v3 = vld [vmem:[%s6560_s4 + $0x118] sm:$0xff] }
 0x185   :  { %4606 = vmatprep.subr.bf16.mxu1 %v4605_v43  ;;  %v4673_v5 = vpack.c.bf16 %v1318_v3, %v1315_v19  ;;  %v2222_v19 = vld [vmem:[#allocation5 + $0x20] sm:$0xff] }
 0x186   :  { %v2218_v3 = vld [vmem:[#allocation5] sm:$0xff] }
 0x187   :  { %3955 = vmatmul.mubr.msk.f32.gmra.mrb[52].mxu1 %vm743_vm0, %v721_v32 }
 0x188   :  { %4608 = vmatpush3.bf16.msra.mxu1 %v4605_v43  ;;  %3957 = vmatprep.mubr.msk.f32.mxu1 %vm743_vm0, %v722_v2  ;;  %v4677_v43 = vpack.c.bf16 %v1324_v30, %v1321_v23  ;;  %v2221_v30 = vld [vmem:[#allocation5 + $0x18] sm:$0xff] }
 0x189   :  { %4610 = vmatprep.subr.bf16.mxu1 %v4609_v48  ;;  %v4759_v46 = vpack.c.bf16 %v2221_v30, %v2218_v3  ;;  %v2255_v3 = vld [vmem:[#allocation5 + $0x128] sm:$0xff] }
 0x18b   :  { %3958 = vmatmul.mubr.msk.f32.gmra.mrb[54].mxu1 %vm743_vm0, %v723_v62 }
 0x18c   :  { %4612 = vmatpush3.bf16.msra.mxu1 %v4609_v48  ;;  %3960 = vmatprep.mubr.msk.f32.mxu1 %vm743_vm0, %v724_v33  ;;  %v4651_v48 = vpack.c.bf16 %v1328_v47, %v1325_v38  ;;  %v2224_v47 = vld [vmem:[#allocation5 + $0x30] sm:$0xff] }
 0x18d   :  { %4614 = vmatprep.subr.bf16.mxu1 %v4613_v20 }
 0x18e   :  { %4652 = vmatpush1.bf16.msra.mxu0 %v4651_v48  ;;  %v2231_v48 = vld [vmem:[#allocation5 + $0x68] sm:$0xff] }
 0x18f   :  { %3961 = vmatmul.mubr.msk.f32.gmra.mrb[56].mxu1 %vm743_vm0, %v725_v8 }
 0x190   :  { %4616 = vmatpush3.bf16.msra.mxu1 %v4613_v20  ;;  %3963 = vmatprep.mubr.msk.f32.mxu1 %vm743_vm0, %v726_v10 }
 0x191   :  { %4618 = vmatprep.subr.bf16.mxu1 %v4617_v1 }
 0x193   :  { %3964 = vmatmul.mubr.msk.f32.gmra.mrb[58].mxu1 %vm743_vm0, %v727_v40 }
 0x194   :  { %4620 = vmatpush3.bf16.msra.mxu1 %v4617_v1  ;;  %3966 = vmatprep.mubr.msk.f32.mxu1 %vm743_vm0, %v728_v13 }
 0x195   :  { %4654 = vmatprep.subr.bf16.mxu1 %v4653_v41 }
 0x197   :  { %3967 = vmatmul.mubr.msk.f32.gmra.mrb[60].mxu1 %vm743_vm0, %v729_v14 }
 0x198   :  { %3989 = vmatprep.mubr.msk.f32.mxu1 %vm743_vm0, %v3289_v39 }
 0x19b   :  { %3990 = vmatmul.mubr.msk.f32.vlgmr.msra.gmra.mrb[50].mxu1 %vm743_vm0, %v3290_v17 }
 0x19c   :  { %3992 = vmatprep.mubr.msk.f32.mxu1 %vm743_vm0, %v3291_v18  ;;  %4656 = vmatpush3.bf16.msra.mxu1 %v4653_v41 }
 0x19d   :  { %4658 = vmatprep.subr.bf16.mxu1 %v4657_v52 }
 0x19f   :  { %3993 = vmatmul.mubr.msk.f32.gmra.mrb[52].mxu1 %vm743_vm0, %v3292_v55 }
 0x1a0   :  { %3995 = vmatprep.mubr.msk.f32.mxu1 %vm743_vm0, %v3293_v25  ;;  %4660 = vmatpush3.bf16.msra.mxu1 %v4657_v52 }
 0x1a1   :  { %4662 = vmatprep.subr.bf16.mxu1 %v4661_v49 }
 0x1a3   :  { %3996 = vmatmul.mubr.msk.f32.gmra.mrb[54].mxu1 %vm743_vm0, %v3294_v28  ;;  %v3314_v28 = vld [vmem:[%s6561_s5 + $0x70] sm:$0xff] }
 0x1a4   :  { %3998 = vmatprep.mubr.msk.f32.mxu1 %vm743_vm0, %v3295_v29  ;;  %4664 = vmatpush3.bf16.msra.mxu1 %v4661_v49 }
 0x1a5   :  { %4666 = vmatprep.subr.bf16.mxu1 %v4665_v53 }
 0x1a7   :  { %3999 = vmatmul.mubr.msk.f32.gmra.mrb[56].mxu1 %vm743_vm0, %v3296_v35 }
 0x1a8   :  { %4001 = vmatprep.mubr.msk.f32.mxu1 %vm743_vm0, %v3297_v9  ;;  %4668 = vmatpush3.bf16.msra.mxu1 %v4665_v53 }
 0x1a9   :  { %4670 = vmatprep.subr.bf16.mxu1 %v4669_v36 }
 0x1ab   :  { %4002 = vmatmul.mubr.msk.f32.gmra.mrb[58].mxu1 %vm743_vm0, %v3298_v37 }
 0x1ac   :  { %4004 = vmatprep.mubr.msk.f32.mxu1 %vm743_vm0, %v3299_v4  ;;  %4672 = vmatpush3.bf16.msra.mxu1 %v4669_v36  ;;  %v2219_v36 = vld [vmem:[#allocation5 + $0x8] sm:$0xff] }
 0x1ad   :  { %4674 = vmatprep.subr.bf16.mxu1 %v4673_v5  ;;  %v4757_v23 = vpack.c.bf16 %v2222_v19, %v2219_v36 }
 0x1af   :  { %4005 = vmatmul.mubr.msk.f32.gmra.mrb[60].mxu1 %vm743_vm0, %v3300_v42  ;;  %v2225_v42 = vld [vmem:[#allocation5 + $0x38] sm:$0xff] }
 0x1b0   :  { %4676 = vmatpush3.bf16.msra.mxu1 %v4673_v5 }
 0x1b1   :  { %4678 = vmatprep.subr.bf16.mxu1 %v4677_v43 }
 0x1b4   :  { %4680 = vmatpush3.bf16.msra.mxu1 %v4677_v43  ;;  %v2228_v43 = vld [vmem:[#allocation5 + $0x50] sm:$0xff] }
 0x1b5   :  { %4682 = vmatprep.subr.bf16.mxu1 %v4681_v7  ;;  %v4761_v38 = vpack.c.bf16 %v2228_v43, %v2225_v42 }
 0x1b8   :  { %4684 = vmatpush3.bf16.msra.mxu1 %v4681_v7  ;;  %v2234_v7 = vld [vmem:[#allocation5 + $0x80] sm:$0xff] }
 0x1b9   :  { %4758 = vmatprep.subr.bf16.mxu1 %v4757_v23 }
 0x26e   :  { %v3991_v54 = vpop.f32.mrb[50].mxu1 }
 0x26f   :  { %v1260_v56 = vadd.f32 %v3991_v54, %v3313_v51  ;;  %v1181_v57 = vpop.f32.mrb[51].mxu1  ;;  %v4763_v54 = vpack.c.bf16 %v2227_v6, %v2224_v47 }
 0x270   :  { %v1259_v20 = vadd.f32 %v3313_v51, %v1181_v57 }
 0x271   :  { %v1272_v59 = vmax.f32 %v1260_v56, 0.0 }
 0x272   :  { %v1271_v58 = vmax.f32 %v1259_v20, 0.0  ;;  %v3994_v22 = vpop.f32.mrb[52].mxu1  ;;  %v4765_v20 = vpack.c.bf16 %v2234_v7, %v2231_v48 }
 0x273   :  { %v1262_v60 = vadd.f32 %v3994_v22, %v3313_v51  ;;  %v1191_v61 = vpop.f32.mrb[53].mxu1  ;;  %v2233_v22 = vld [vmem:[#allocation5 + $0x78] sm:$0xff] }
 0x274   :  { %v1261_v63 = vadd.f32 %v3313_v51, %v1191_v61  ;;  %1396 = vmatmul.mubr.f32.vlgmr.msra.gmra.mrb[20].mxu0 %v1271_v58  ;;  %4039 = vmatprep.mubr.f32.mxu1 %v1271_v58  ;;  %v2230_v58 = vld [vmem:[#allocation5 + $0x60] sm:$0xff]  ;;  %v2240_v61 = vld [vmem:[#allocation5 + $0xb0] sm:$0xff] }
 0x275   :  { %4040 = vmatmul.mubr.f32.vlgmr.msra.gmra.mrb[62].mxu1 %v1272_v59  ;;  %1401 = vmatprep.mubr.f32.mxu0 %v5093_v0  ;;  %v1274_v2 = vmax.f32 %v1262_v60, 0.0  ;;  %v2237_v60 = vld [vmem:[#allocation5 + $0x98] sm:$0xff] }
 0x276   :  { %v1273_v1 = vmax.f32 %v1261_v63, 0.0  ;;  %v3997_v32 = vpop.f32.mrb[54].mxu1  ;;  %4760 = vmatpush1.bf16.msra.mxu1 %v4759_v46 }
 0x277   :  { %v1264_v62 = vadd.f32 %v3997_v32, %v3313_v51  ;;  %v1201_v33 = vpop.f32.mrb[55].mxu1  ;;  %4762 = vmatprep.subr.bf16.mxu1 %v4761_v38  ;;  %v4767_v32 = vpack.c.bf16 %v2233_v22, %v2230_v58 }
 0x278   :  { %v1263_v8 = vadd.f32 %v3313_v51, %v1201_v33  ;;  %1402 = vmatmul.mubr.f32.gmra.mrb[22].mxu0 %v1272_v59  ;;  %4042 = vmatprep.mubr.f32.mxu1 %v1273_v1 }
 0x279   :  { %4043 = vmatmul.mubr.f32.gmra.mrb[64].mxu1 %v1274_v2  ;;  %1407 = vmatprep.mubr.f32.mxu0 %v5093_v0  ;;  %v1276_v26 = vmax.f32 %v1264_v62, 0.0 }
 0x27a   :  { %v1275_v10 = vmax.f32 %v1263_v8, 0.0  ;;  %v4000_v11 = vpop.f32.mrb[56].mxu1  ;;  %4764 = vmatpush1.bf16.msra.mxu1 %v4763_v54  ;;  %v4769_v8 = vpack.c.bf16 %v2240_v61, %v2237_v60 }
 0x27b   :  { %v1266_v40 = vadd.f32 %v4000_v11, %v3313_v51  ;;  %v1211_v13 = vpop.f32.mrb[57].mxu1  ;;  %4766 = vmatprep.subr.bf16.mxu1 %v4765_v20  ;;  %v2239_v11 = vld [vmem:[#allocation5 + $0xa8] sm:$0xff] }
 0x27c   :  { %v1265_v41 = vadd.f32 %v3313_v51, %v1211_v13  ;;  %1408 = vmatmul.mubr.f32.gmra.mrb[24].mxu0 %v1273_v1  ;;  %4045 = vmatprep.mubr.f32.mxu1 %v1275_v10  ;;  %v2243_v13 = vld [vmem:[#allocation5 + $0xc8] sm:$0xff] }
 0x27d   :  { %4046 = vmatmul.mubr.f32.gmra.mrb[66].mxu1 %v1276_v26  ;;  %1413 = vmatprep.mubr.f32.mxu0 %v5093_v0  ;;  %v1278_v15 = vmax.f32 %v1266_v40, 0.0 }
 0x27e   :  { %v1277_v14 = vmax.f32 %v1265_v41, 0.0  ;;  %v4003_v39 = vpop.f32.mrb[58].mxu1  ;;  %v2246_v41 = vld [vmem:[#allocation5 + $0xe0] sm:$0xff]  ;;  %4768 = vmatpush1.bf16.msra.mxu1 %v4767_v32  ;;  %v3315_v32 = vld [vmem:[%s6561_s5 + $0x78] sm:$0xff] }
 0x27f   :  { %v1268_v16 = vadd.f32 %v4003_v39, %v3313_v51  ;;  %v1221_v17 = vpop.f32.mrb[59].mxu1  ;;  %4770 = vmatprep.subr.bf16.mxu1 %v4769_v8  ;;  %v3318_v8 = vld [vmem:[%s6561_s5 + $0x90] sm:$0xff] }
 0x280   :  { %v1267_v18 = vadd.f32 %v3313_v51, %v1221_v17  ;;  %1414 = vmatmul.mubr.f32.gmra.mrb[26].mxu0 %v1274_v2  ;;  %4048 = vmatprep.mubr.f32.mxu1 %v1277_v14 }
 0x281   :  { %4049 = vmatmul.mubr.f32.gmra.mrb[68].mxu1 %v1278_v15  ;;  %1419 = vmatprep.mubr.f32.mxu0 %v5093_v0  ;;  %v1280_v24 = vmax.f32 %v1268_v16, 0.0 }
 0x282   :  { %v1279_v52 = vmax.f32 %v1267_v18, 0.0  ;;  %v4006_v21 = vpop.f32.mrb[60].mxu1  ;;  %v4773_v18 = vpack.c.bf16 %v2246_v41, %v2243_v13  ;;  %v3325_v13 = vld [vmem:[%s6561_s5 + $0xc8] sm:$0xff]  ;;  %v3326_v41 = vld [vmem:[%s6561_s5 + $0xd0] sm:$0xff] }
 0x283   :  { %v1270_v55 = vadd.f32 %v4006_v21, %v3313_v51  ;;  %v1231_v25 = vpop.f32.mrb[61].mxu1  ;;  %v2245_v21 = vld [vmem:[#allocation5 + $0xd8] sm:$0xff] }
 0x284   :  { %v1269_v49 = vadd.f32 %v3313_v51, %v1231_v25  ;;  %1420 = vmatmul.mubr.f32.gmra.mrb[28].mxu0 %v1275_v10  ;;  %4051 = vmatprep.mubr.f32.mxu1 %v1279_v52  ;;  %v2236_v10 = vld [vmem:[#allocation5 + $0x90] sm:$0xff] }
 0x285   :  { %4052 = vmatmul.mubr.f32.gmra.mrb[70].mxu1 %v1280_v24  ;;  %1425 = vmatprep.mubr.f32.mxu0 %v5093_v0  ;;  %v1282_v27 = vmax.f32 %v1270_v55, 0.0  ;;  %v2249_v55 = vld [vmem:[#allocation5 + $0xf8] sm:$0xff]  ;;  %v2252_v25 = vld [vmem:[#allocation5 + $0x110] sm:$0xff] }
 0x286   :  { %v1281_v12 = vmax.f32 %v1269_v49, 0.0 }
 0x288   :  { %1426 = vmatmul.mubr.f32.gmra.mrb[30].mxu0 %v1276_v26  ;;  %4054 = vmatprep.mubr.f32.mxu1 %v1281_v12 }
 0x289   :  { %4055 = vmatmul.mubr.f32.gmra.mrb[72].mxu1 %v1282_v27  ;;  %1431 = vmatprep.mubr.f32.mxu0 %v5093_v0 }
 0x28a   :  { %2330 = vmatprep.mubr.f32.mxu1 %v5093_v0 }
 0x28c   :  { %1432 = vmatmul.mubr.f32.gmra.mrb[32].mxu0 %v1277_v14 }
 0x28d   :  { %1437 = vmatprep.mubr.f32.mxu0 %v5093_v0 }
 0x290   :  { %1438 = vmatmul.mubr.f32.gmra.mrb[34].mxu0 %v1278_v15  ;;  %v4771_v15 = vpack.c.bf16 %v2239_v11, %v2236_v10  ;;  %v3320_v10 = vld [vmem:[%s6561_s5 + $0xa0] sm:$0xff]  ;;  %v3322_v11 = vld [vmem:[%s6561_s5 + $0xb0] sm:$0xff] }
 0x291   :  { %1443 = vmatprep.mubr.f32.mxu0 %v5093_v0 }
 0x292   :  { %4772 = vmatpush1.bf16.msra.mxu1 %v4771_v15  ;;  %v1593_v15 = vld [vmem:[%s6561_s5] sm:$0xff] }
 0x293   :  { %4774 = vmatprep.subr.bf16.mxu1 %v4773_v18  ;;  %v1596_v18 = vld [vmem:[%s6561_s5 + $0x18] sm:$0xff] }
 0x294   :  { %1444 = vmatmul.mubr.f32.gmra.mrb[36].mxu0 %v1279_v52  ;;  %v2242_v52 = vld [vmem:[#allocation5 + $0xc0] sm:$0xff] }
 0x295   :  { %1449 = vmatprep.mubr.f32.mxu0 %v5093_v0 }
 0x298   :  { %1450 = vmatmul.mubr.f32.gmra.mrb[38].mxu0 %v1280_v24 }
 0x299   :  { %1455 = vmatprep.mubr.f32.mxu0 %v5093_v0 }
 0x29c   :  { %1456 = vmatmul.mubr.f32.gmra.mrb[40].mxu0 %v1281_v12 }
 0x29d   :  { %1461 = vmatprep.mubr.f32.mxu0 %v5093_v0 }
 0x2a0   :  { %1462 = vmatmul.mubr.f32.gmra.mrb[42].mxu0 %v1282_v27  ;;  %v4775_v27 = vpack.c.bf16 %v2245_v21, %v2242_v52  ;;  %v1597_v52 = vld [vmem:[%s6561_s5 + $0x20] sm:$0xff]  ;;  %v1599_v21 = vld [vmem:[%s6561_s5 + $0x30] sm:$0xff] }
 0x2a1   :  { %4081 = vmatprep.mubr.msk.f32.mxu0 %vm1622_vm1, %v3314_v28 }
 0x2a2   :  { %4776 = vmatpush1.bf16.msra.mxu1 %v4775_v27  ;;  %v3357_v27 = vld [vmem:[%s6561_s5 + $0xe8] sm:$0xff] }
 0x347   :  { %v1397_v29 = vpop.f32.mrb[20].mxu0 }
 0x348   :  { %v1399_v53 = vpop.f32.mrb[21].mxu0  ;;  %v4041_v31 = vpop.f32.mrb[62].mxu1 }
 0x349   :  { %v1534_v34 = vpop.f32.mrb[63].mxu1 }
 0x34a   :  { %v6058_v35 = vpack.c.bf16 %v4041_v31, %v1534_v34  ;;  %v4777_v31 = vpack.c.bf16 %v2252_v25, %v2249_v55  ;;  %v2248_v34 = vld [vmem:[#allocation5 + $0xf0] sm:$0xff]  ;;  %v1603_v55 = vld [vmem:[%s6561_s5 + $0x50] sm:$0xff] }
 0x34b   :  { %v1403_v9 = vpop.f32.mrb[22].mxu0  ;;  %v1605_v25 = vld [vmem:[%s6561_s5 + $0x60] sm:$0xff] }
 0x34c   :  { %v6060_v37 = vpack.c.bf16 %v1403_v9, %v1397_v29  ;;  %v1405_v4 = vpop.f32.mrb[23].mxu0  ;;  %v4044_v5 = vpop.f32.mrb[64].mxu1  ;;  %v2251_v9 = vld [vmem:[#allocation5 + $0x108] sm:$0xff]  ;;  %4778 = vmatprep.subr.bf16.mxu1 %v4777_v31  ;;  %v3361_v31 = vld [vmem:[%s6561_s5 + $0x108] sm:$0xff] }
 0x34d   :  { %v4685_v44 = vpack.c.bf16 %v1405_v4, %v1399_v53  ;;  %v1544_v45 = vpop.f32.mrb[65].mxu1  ;;  %v2258_v4 = vld [vmem:[#allocation5 + $0x140] sm:$0xff]  ;;  %v4779_v30 = vpack.c.bf16 %v2251_v9, %v2248_v34  ;;  %v3363_v9 = vld [vmem:[%s6561_s5 + $0x118] sm:$0xff] }
 0x34e   :  { %v6062_v50 = vpack.c.bf16 %v4044_v5, %v1544_v45  ;;  %v4781_v43 = vpack.c.bf16 %v2258_v4, %v2255_v3  ;;  %v2257_v45 = vld [vmem:[#allocation5 + $0x138] sm:$0xff]  ;;  %v3362_v34 = vld [vmem:[%s6561_s5 + $0x110] sm:$0xff]  ;;  %v3367_v4 = vld [vmem:[%s6561_s5 + $0x138] sm:$0xff] }
 0x34f   :  { %v1409_v51 = vpop.f32.mrb[24].mxu0  ;;  %4686 = vmatprep.subr.bf16.mxu0 %v4685_v44  ;;  %4780 = vmatpush1.bf16.msra.mxu1 %v4779_v30  ;;  %v3366_v3 = vld [vmem:[%s6561_s5 + $0x130] sm:$0xff]  ;;  %v2261_v30 = vld [vmem:[#allocation5 + $0x158] sm:$0xff] }
 0x350   :  { %v1411_v56 = vpop.f32.mrb[25].mxu0  ;;  %v4047_v57 = vpop.f32.mrb[66].mxu1  ;;  %4688 = vmatpush3.bf16.msra.mxu0 %v4685_v44  ;;  %v2254_v44 = vld [vmem:[#allocation5 + $0x120] sm:$0xff]  ;;  %4782 = vmatprep.subr.bf16.mxu1 %v4781_v43 }
 0x351   :  { %v1554_v59 = vpop.f32.mrb[67].mxu1  ;;  %v4783_v38 = vpack.c.bf16 %v2257_v45, %v2254_v44  ;;  %v2260_v44 = vld [vmem:[#allocation5 + $0x150] sm:$0xff]  ;;  %v2263_v45 = vld [vmem:[#allocation5 + $0x168] sm:$0xff] }
 0x352   :  { %v6064_v63 = vpack.c.bf16 %v4047_v57, %v1554_v59 }
 0x353   :  { %v1415_v1 = vpop.f32.mrb[26].mxu0  ;;  %4784 = vmatpush1.bf16.msra.mxu1 %v4783_v38  ;;  %v2220_v38 = vld [vmem:[#allocation5 + $0x10] sm:$0xff] }
 0x354   :  { %v6066_v2 = vpack.c.bf16 %v1415_v1, %v1409_v51  ;;  %v1417_v62 = vpop.f32.mrb[27].mxu0  ;;  %v4050_v33 = vpop.f32.mrb[68].mxu1 }
 0x355   :  { %v4689_v26 = vpack.c.bf16 %v1417_v62, %v1411_v56  ;;  %v1564_v40 = vpop.f32.mrb[69].mxu1  ;;  %v3316_v62 = vld [vmem:[%s6561_s5 + $0x80] sm:$0xff] }
 0x356   :  { %v6068_v14 = vpack.c.bf16 %v4050_v33, %v1564_v40  ;;  %v3317_v33 = vld [vmem:[%s6561_s5 + $0x88] sm:$0xff]  ;;  %v3324_v40 = vld [vmem:[%s6561_s5 + $0xc0] sm:$0xff] }
 0x357   :  { %v1421_v39 = vpop.f32.mrb[28].mxu0  ;;  %4690 = vmatprep.subr.bf16.mxu0 %v4689_v26 }
 0x358   :  { %v1423_v16 = vpop.f32.mrb[29].mxu0  ;;  %v4053_v17 = vpop.f32.mrb[70].mxu1  ;;  %4692 = vmatpush3.bf16.msra.mxu0 %v4689_v26  ;;  %v3323_v26 = vld [vmem:[%s6561_s5 + $0xb8] sm:$0xff] }
 0x359   :  { %v1574_v24 = vpop.f32.mrb[71].mxu1 }
 0x35a   :  { %v6070_v49 = vpack.c.bf16 %v4053_v17, %v1574_v24  ;;  %v1595_v17 = vld [vmem:[%s6561_s5 + $0x10] sm:$0xff]  ;;  %v1601_v24 = vld [vmem:[%s6561_s5 + $0x40] sm:$0xff] }
 0x35b   :  { %v1427_v12 = vpop.f32.mrb[30].mxu0 }
 0x35c   :  { %v6072_v28 = vpack.c.bf16 %v1427_v12, %v1421_v39  ;;  %v1429_v29 = vpop.f32.mrb[31].mxu0  ;;  %v4056_v53 = vpop.f32.mrb[72].mxu1  ;;  %v3327_v39 = vld [vmem:[%s6561_s5 + $0xd8] sm:$0xff]  ;;  %v3356_v12 = vld [vmem:[%s6561_s5 + $0xe0] sm:$0xff] }
 0x35d   :  { %v4693_v36 = vpack.c.bf16 %v1429_v29, %v1423_v16  ;;  %v1584_v19 = vpop.f32.mrb[73].mxu1  ;;  %v1594_v16 = vld [vmem:[%s6561_s5 + $0x8] sm:$0xff]  ;;  %v3359_v29 = vld [vmem:[%s6561_s5 + $0xf8] sm:$0xff] }
 0x35e   :  { %v6074_v5 = vpack.c.bf16 %v4056_v53, %v1584_v19  ;;  %v3360_v53 = vld [vmem:[%s6561_s5 + $0x100] sm:$0xff]  ;;  %v3365_v19 = vld [vmem:[%s6561_s5 + $0x128] sm:$0xff] }
 0x35f   :  { %v1433_v23 = vpop.f32.mrb[32].mxu0  ;;  %4694 = vmatprep.subr.bf16.mxu0 %v4693_v36 }
 0x360   :  { %v1435_v42 = vpop.f32.mrb[33].mxu0  ;;  %4696 = vmatpush3.bf16.msra.mxu0 %v4693_v36  ;;  %v3364_v36 = vld [vmem:[%s6561_s5 + $0x120] sm:$0xff] }
 0x363   :  { %v1439_v46 = vpop.f32.mrb[34].mxu0 }
 0x364   :  { %v4721_v47 = vpack.c.bf16 %v1439_v46, %v1433_v23  ;;  %v1441_v6 = vpop.f32.mrb[35].mxu0  ;;  %v3369_v23 = vld [vmem:[%s6561_s5 + $0x148] sm:$0xff]  ;;  %v4787_v46 = vpack.c.bf16 %v2263_v45, %v2260_v44 }
 0x365   :  { %v4697_v48 = vpack.c.bf16 %v1441_v6, %v1435_v42  ;;  %v2264_v42 = vld [vmem:[#allocation5 + $0x170] sm:$0xff] }
 0x366   :  { %v4785_v43 = vpack.c.bf16 %v2264_v42, %v2261_v30 }
 0x367   :  { %v1445_v7 = vpop.f32.mrb[36].mxu0  ;;  %4698 = vmatprep.subr.bf16.mxu0 %v4697_v48 }
 0x368   :  { %v1447_v51 = vpop.f32.mrb[37].mxu0  ;;  %4700 = vmatpush3.bf16.msra.mxu0 %v4697_v48  ;;  %4786 = vmatprep.subr.bf16.mxu1 %v4785_v43  ;;  %v6261_v48 = vld [vmem:[%s6562_s6] ss:$0 sm:$0xff] }
 0x369   :  { %4788 = vmatpush1.bf16.msra.mxu1 %v4787_v46 }
 0x36b   :  { %v1451_v54 = vpop.f32.mrb[38].mxu0 }
 0x36c   :  { %v4725_v56 = vpack.c.bf16 %v1451_v54, %v1445_v7  ;;  %v1453_v57 = vpop.f32.mrb[39].mxu0  ;;  %v2226_v54 = vld [vmem:[#allocation5 + $0x40] sm:$0xff] }
 0x36d   :  { %v4701_v20 = vpack.c.bf16 %v1453_v57, %v1447_v51 }
 0x36f   :  { %v1457_v58 = vpop.f32.mrb[40].mxu0  ;;  %4702 = vmatprep.subr.bf16.mxu0 %v4701_v20 }
 0x370   :  { %v1459_v22 = vpop.f32.mrb[41].mxu0  ;;  %4704 = vmatpush3.bf16.msra.mxu0 %v4701_v20 }
 0x373   :  { %v1463_v59 = vpop.f32.mrb[42].mxu0 }
 0x374   :  { %v4729_v60 = vpack.c.bf16 %v1463_v59, %v1457_v58  ;;  %v1465_v61 = vpop.f32.mrb[43].mxu0 }
 0x375   :  { %v4705_v1 = vpack.c.bf16 %v1465_v61, %v1459_v22  ;;  %v2232_v61 = vld [vmem:[#allocation5 + $0x70] sm:$0xff] }
 0x377   :  { %4706 = vmatprep.subr.bf16.mxu0 %v4705_v1 }
 0x378   :  { %4708 = vmatpush3.bf16.msra.mxu0 %v4705_v1  ;;  %v2235_v1 = vld [vmem:[#allocation5 + $0x88] sm:$0xff] }
 0x379   :  { %4710 = vmatprep.subr.bf16.mxu0 %v6060_v37 }
 0x37b   :  { %4082 = vmatmul.mubr.msk.f32.vlgmr.msra.gmra.mrb[44].mxu0 %vm1622_vm1, %v3315_v32 }
 0x37c   :  { %4712 = vmatpush3.bf16.msra.mxu0 %v6060_v37  ;;  %4084 = vmatprep.mubr.msk.f32.mxu0 %vm1622_vm1, %v3316_v62  ;;  %v3319_v37 = vld [vmem:[%s6561_s5 + $0x98] sm:$0xff] }
 0x37d   :  { %4714 = vmatprep.subr.bf16.mxu0 %v6066_v2 }
 0x37f   :  { %4085 = vmatmul.mubr.msk.f32.gmra.mrb[46].mxu0 %vm1622_vm1, %v3317_v33 }
 0x380   :  { %4716 = vmatpush3.bf16.msra.mxu0 %v6066_v2  ;;  %4087 = vmatprep.mubr.msk.f32.mxu0 %vm1622_vm1, %v3318_v8  ;;  %v3321_v2 = vld [vmem:[%s6561_s5 + $0xa8] sm:$0xff]  ;;  %v4797_v8 = vpack.c.bf16 %v2235_v1, %v2232_v61 }
 0x381   :  { %4718 = vmatprep.subr.bf16.mxu0 %v6072_v28 }
 0x383   :  { %4088 = vmatmul.mubr.msk.f32.gmra.mrb[48].mxu0 %vm1622_vm1, %v3319_v37 }
 0x384   :  { %4720 = vmatpush3.bf16.msra.mxu0 %v6072_v28  ;;  %4090 = vmatprep.mubr.msk.f32.mxu0 %vm1622_vm1, %v3320_v10  ;;  %v3358_v28 = vld [vmem:[%s6561_s5 + $0xf0] sm:$0xff] }
 0x385   :  { %4722 = vmatprep.subr.bf16.mxu0 %v4721_v47  ;;  %v2238_v10 = vld [vmem:[#allocation5 + $0xa0] sm:$0xff] }
 0x387   :  { %4091 = vmatmul.mubr.msk.f32.gmra.mrb[50].mxu0 %vm1622_vm1, %v3321_v2  ;;  %v2241_v2 = vld [vmem:[#allocation5 + $0xb8] sm:$0xff] }
 0x388   :  { %4724 = vmatpush3.bf16.msra.mxu0 %v4721_v47  ;;  %4093 = vmatprep.mubr.msk.f32.mxu0 %vm1622_vm1, %v3322_v11  ;;  %v2223_v47 = vld [vmem:[#allocation5 + $0x28] sm:$0xff] }
 0x389   :  { %4726 = vmatprep.subr.bf16.mxu0 %v4725_v56  ;;  %v4789_v6 = vpack.c.bf16 %v2223_v47, %v2220_v38 }
 0x38b   :  { %4094 = vmatmul.mubr.msk.f32.gmra.mrb[52].mxu0 %vm1622_vm1, %v3323_v26  ;;  %4790 = vmatprep.subr.bf16.mxu1 %v4789_v6 }
 0x38c   :  { %4728 = vmatpush3.bf16.msra.mxu0 %v4725_v56  ;;  %4096 = vmatprep.mubr.msk.f32.mxu0 %vm1622_vm1, %v3324_v40  ;;  %v2229_v56 = vld [vmem:[#allocation5 + $0x58] sm:$0xff] }
 0x38d   :  { %4730 = vmatprep.subr.bf16.mxu0 %v4729_v60  ;;  %v4793_v59 = vpack.c.bf16 %v2229_v56, %v2226_v54 }
 0x38f   :  { %4097 = vmatmul.mubr.msk.f32.gmra.mrb[54].mxu0 %vm1622_vm1, %v3325_v13  ;;  %v4801_v13 = vpack.c.bf16 %v2241_v2, %v2238_v10 }
 0x390   :  { %4732 = vmatpush3.bf16.msra.mxu0 %v4729_v60  ;;  %4099 = vmatprep.mubr.msk.f32.mxu0 %vm1622_vm1, %v3326_v41 }
 0x391   :  { %4734 = vmatprep.subr.bf16.mxu0 %v6058_v35 }
 0x393   :  { %4100 = vmatmul.mubr.msk.f32.gmra.mrb[56].mxu0 %vm1622_vm1, %v3327_v39  ;;  %v2244_v39 = vld [vmem:[#allocation5 + $0xd0] sm:$0xff] }
 0x394   :  { %4126 = vmatprep.mubr.msk.f32.mxu0 %vm1622_vm1, %v1593_v15  ;;  %v2247_v15 = vld [vmem:[#allocation5 + $0xe8] sm:$0xff] }
 0x397   :  { %4127 = vmatmul.mubr.msk.f32.vlgmr.msra.gmra.mrb[44].mxu0 %vm1622_vm1, %v1594_v16 }
 0x398   :  { %4736 = vmatpush3.bf16.msra.mxu0 %v6058_v35  ;;  %4129 = vmatprep.mubr.msk.f32.mxu0 %vm1622_vm1, %v1595_v17  ;;  %v1598_v35 = vld [vmem:[%s6561_s5 + $0x28] sm:$0xff] }
 0x399   :  { %4738 = vmatprep.subr.bf16.mxu0 %v6062_v50 }
 0x39b   :  { %4130 = vmatmul.mubr.msk.f32.gmra.mrb[46].mxu0 %vm1622_vm1, %v1596_v18 }
 0x39c   :  { %4740 = vmatpush3.bf16.msra.mxu0 %v6062_v50  ;;  %4132 = vmatprep.mubr.msk.f32.mxu0 %vm1622_vm1, %v1597_v52  ;;  %v1600_v50 = vld [vmem:[%s6561_s5 + $0x38] sm:$0xff]  ;;  %v4805_v52 = vpack.c.bf16 %v2247_v15, %v2244_v39 }
 0x39d   :  { %4742 = vmatprep.subr.bf16.mxu0 %v6064_v63 }
 0x39f   :  { %4133 = vmatmul.mubr.msk.f32.gmra.mrb[48].mxu0 %vm1622_vm1, %v1598_v35 }
 0x3a0   :  { %4744 = vmatpush3.bf16.msra.mxu0 %v6064_v63  ;;  %4135 = vmatprep.mubr.msk.f32.mxu0 %vm1622_vm1, %v1599_v21  ;;  %v1602_v63 = vld [vmem:[%s6561_s5 + $0x48] sm:$0xff]  ;;  %v2250_v21 = vld [vmem:[#allocation5 + $0x100] sm:$0xff] }
 0x3a1   :  { %4746 = vmatprep.subr.bf16.mxu0 %v6068_v14 }
 0x3a3   :  { %4136 = vmatmul.mubr.msk.f32.gmra.mrb[50].mxu0 %vm1622_vm1, %v1600_v50  ;;  %v2253_v50 = vld [vmem:[#allocation5 + $0x118] sm:$0xff] }
 0x3a4   :  { %4748 = vmatpush3.bf16.msra.mxu0 %v6068_v14  ;;  %4138 = vmatprep.mubr.msk.f32.mxu0 %vm1622_vm1, %v1601_v24  ;;  %v1604_v14 = vld [vmem:[%s6561_s5 + $0x58] sm:$0xff] }
 0x3a5   :  { %4750 = vmatprep.subr.bf16.mxu0 %v6070_v49 }
 0x3a7   :  { %4139 = vmatmul.mubr.msk.f32.gmra.mrb[52].mxu0 %vm1622_vm1, %v1602_v63 }
 0x3a8   :  { %4752 = vmatpush3.bf16.msra.mxu0 %v6070_v49  ;;  %4141 = vmatprep.mubr.msk.f32.mxu0 %vm1622_vm1, %v1603_v55  ;;  %v1606_v49 = vld [vmem:[%s6561_s5 + $0x68] sm:$0xff] }
 0x3a9   :  { %4754 = vmatprep.subr.bf16.mxu0 %v6074_v5 }
 0x3ab   :  { %4142 = vmatmul.mubr.msk.f32.gmra.mrb[54].mxu0 %vm1622_vm1, %v1604_v14  ;;  %v4809_v14 = vpack.c.bf16 %v2253_v50, %v2250_v21 }
 0x3ac   :  { %4756 = vmatpush3.bf16.msra.mxu0 %v6074_v5  ;;  %4144 = vmatprep.mubr.msk.f32.mxu0 %vm1622_vm1, %v1605_v25  ;;  %v3368_v5 = vld [vmem:[%s6561_s5 + $0x140] sm:$0xff] }
 0x3af   :  { %4145 = vmatmul.mubr.msk.f32.gmra.mrb[56].mxu0 %vm1622_vm1, %v1606_v49  ;;  %v2256_v49 = vld [vmem:[#allocation5 + $0x130] sm:$0xff] }
 0x3b0   :  { %4171 = vmatprep.mubr.msk.f32.mxu0 %vm1622_vm1, %v3356_v12  ;;  %v2259_v12 = vld [vmem:[#allocation5 + $0x148] sm:$0xff] }
 0x3b3   :  { %4172 = vmatmul.mubr.msk.f32.vlgmr.msra.gmra.mrb[44].mxu0 %vm1622_vm1, %v3357_v27 }
 0x3b4   :  { %4174 = vmatprep.mubr.msk.f32.mxu0 %vm1622_vm1, %v3358_v28 }
 0x3b7   :  { %4175 = vmatmul.mubr.msk.f32.gmra.mrb[46].mxu0 %vm1622_vm1, %v3359_v29 }
 0x3b8   :  { %4177 = vmatprep.mubr.msk.f32.mxu0 %vm1622_vm1, %v3360_v53  ;;  %v4813_v53 = vpack.c.bf16 %v2259_v12, %v2256_v49 }
 0x3bb   :  { %4178 = vmatmul.mubr.msk.f32.gmra.mrb[48].mxu0 %vm1622_vm1, %v3361_v31 }
 0x3bc   :  { %4180 = vmatprep.mubr.msk.f32.mxu0 %vm1622_vm1, %v3362_v34  ;;  %v2262_v34 = vld [vmem:[#allocation5 + $0x160] sm:$0xff] }
 0x3bf   :  { %4181 = vmatmul.mubr.msk.f32.gmra.mrb[50].mxu0 %vm1622_vm1, %v3363_v9  ;;  %v2265_v9 = vld [vmem:[#allocation5 + $0x178] sm:$0xff] }
 0x3c0   :  { %4183 = vmatprep.mubr.msk.f32.mxu0 %vm1622_vm1, %v3364_v36 }
 0x3c3   :  { %4184 = vmatmul.mubr.msk.f32.gmra.mrb[52].mxu0 %vm1622_vm1, %v3365_v19 }
 0x3c4   :  { %4186 = vmatprep.mubr.msk.f32.mxu0 %vm1622_vm1, %v3366_v3  ;;  %v4817_v3 = vpack.c.bf16 %v2265_v9, %v2262_v34  ;;  %v3387_v9 = vld [vmem:[%s6564_s8 + $0x90] sm:$0xff] }
 0x3c7   :  { %4187 = vmatmul.mubr.msk.f32.gmra.mrb[54].mxu0 %vm1622_vm1, %v3367_v4 }
 0x3c8   :  { %4189 = vmatprep.mubr.msk.f32.mxu0 %vm1622_vm1, %v3368_v5 }
 0x3cb   :  { %4190 = vmatmul.mubr.msk.f32.gmra.mrb[56].mxu0 %vm1622_vm1, %v3369_v23 }
 0x486   :  { %v4173_v7 = vpop.f32.mrb[44].mxu0 }
 0x487   :  { %v2100_v51 = vpop.f32.mrb[45].mxu0  ;;  %v6267_v20 = vadd.f32 %v4173_v7, %v6261_v48 }
 0x488   :  { %v6264_v57 = vadd.f32 %v6261_v48, %v2100_v51 }
 0x489   :  { %v2205_v32 = vmax.f32 %v6267_v20, 0.0 }
 0x48a   :  { %v2204_v58 = vmax.f32 %v6264_v57, 0.0  ;;  %v4176_v22 = vpop.f32.mrb[46].mxu0 }
 0x48b   :  { %v2110_v60 = vpop.f32.mrb[47].mxu0  ;;  %v6281_v11 = vadd.f32 %v4176_v22, %v6261_v48 }
 0x48c   :  { %2331 = vmatmul.mubr.f32.vlgmr.msra.gmra.mrb[74].mxu1 %v2204_v58  ;;  %v6275_v62 = vadd.f32 %v6261_v48, %v2110_v60 }
 0x48d   :  { %2336 = vmatprep.mubr.f32.mxu1 %v5093_v0  ;;  %4792 = vmatpush3.bf16.msra.mxu1 %v4789_v6  ;;  %v2207_v16 = vmax.f32 %v6281_v11, 0.0 }
 0x48e   :  { %v4179_v33 = vpop.f32.mrb[48].mxu0  ;;  %4794 = vmatprep.subr.bf16.mxu1 %v4793_v59  ;;  %v2206_v26 = vmax.f32 %v6275_v62, 0.0 }
 0x48f   :  { %v2120_v37 = vpop.f32.mrb[49].mxu0  ;;  %v2195_v24 = vadd.f32 %v4179_v33, %v6261_v48 }
 0x490   :  { %2337 = vmatmul.mubr.f32.gmra.mrb[76].mxu1 %v2205_v32  ;;  %v6289_v17 = vadd.f32 %v6261_v48, %v2120_v37 }
 0x491   :  { %2342 = vmatprep.mubr.f32.mxu1 %v5093_v0  ;;  %4796 = vmatpush3.bf16.msra.mxu1 %v4793_v59  ;;  %v2209_v27 = vmax.f32 %v2195_v24, 0.0 }
 0x492   :  { %v4182_v40 = vpop.f32.mrb[50].mxu0  ;;  %4798 = vmatprep.subr.bf16.mxu1 %v4797_v8  ;;  %v2208_v63 = vmax.f32 %v6289_v17, 0.0 }
 0x493   :  { %v2130_v41 = vpop.f32.mrb[51].mxu0  ;;  %v2197_v36 = vadd.f32 %v4182_v40, %v6261_v48 }
 0x494   :  { %2343 = vmatmul.mubr.f32.gmra.mrb[78].mxu1 %v2206_v26  ;;  %v2196_v28 = vadd.f32 %v6261_v48, %v2130_v41 }
 0x495   :  { %2348 = vmatprep.mubr.f32.mxu1 %v5093_v0  ;;  %4800 = vmatpush3.bf16.msra.mxu1 %v4797_v8  ;;  %v2211_v4 = vmax.f32 %v2197_v36, 0.0 }
 0x496   :  { %v4185_v18 = vpop.f32.mrb[52].mxu0  ;;  %4802 = vmatprep.subr.bf16.mxu1 %v4801_v13  ;;  %v2210_v19 = vmax.f32 %v2196_v28, 0.0 }
 0x497   :  { %v2140_v35 = vpop.f32.mrb[53].mxu0  ;;  %v2199_v23 = vadd.f32 %v4185_v18, %v6261_v48 }
 0x498   :  { %2349 = vmatmul.mubr.f32.gmra.mrb[80].mxu1 %v2207_v16  ;;  %v2198_v5 = vadd.f32 %v6261_v48, %v2140_v35 }
 0x499   :  { %2354 = vmatprep.mubr.f32.mxu1 %v5093_v0  ;;  %4804 = vmatpush3.bf16.msra.mxu1 %v4801_v13  ;;  %v2213_v42 = vmax.f32 %v2199_v23, 0.0 }
 0x49a   :  { %v4188_v55 = vpop.f32.mrb[54].mxu0  ;;  %4806 = vmatprep.subr.bf16.mxu1 %v4805_v52  ;;  %v2212_v30 = vmax.f32 %v2198_v5, 0.0  ;;  %v3389_v5 = vld [vmem:[%s6564_s8 + $0xa0] sm:$0xff] }
 0x49b   :  { %v2150_v25 = vpop.f32.mrb[55].mxu0  ;;  %v2201_v44 = vadd.f32 %v4188_v55, %v6261_v48 }
 0x49c   :  { %2355 = vmatmul.mubr.f32.gmra.mrb[82].mxu1 %v2208_v63  ;;  %v2200_v43 = vadd.f32 %v6261_v48, %v2150_v25 }
 0x49d   :  { %2360 = vmatprep.mubr.f32.mxu1 %v5093_v0  ;;  %4808 = vmatpush3.bf16.msra.mxu1 %v4805_v52  ;;  %v2215_v46 = vmax.f32 %v2201_v44, 0.0  ;;  %v3391_v44 = vld [vmem:[%s6564_s8 + $0xb0] sm:$0xff] }
 0x49e   :  { %v4191_v29 = vpop.f32.mrb[56].mxu0  ;;  %4810 = vmatprep.subr.bf16.mxu1 %v4809_v14  ;;  %v2214_v45 = vmax.f32 %v2200_v43, 0.0 }
 0x49f   :  { %v2160_v31 = vpop.f32.mrb[57].mxu0  ;;  %v2203_v47 = vadd.f32 %v4191_v29, %v6261_v48 }
 0x4a0   :  { %2361 = vmatmul.mubr.f32.gmra.mrb[84].mxu1 %v2209_v27  ;;  %v2202_v38 = vadd.f32 %v6261_v48, %v2160_v31  ;;  %v3386_v31 = vld [vmem:[%s6564_s8 + $0x88] sm:$0xff] }
 0x4a1   :  { %2366 = vmatprep.mubr.f32.mxu1 %v5093_v0  ;;  %4812 = vmatpush3.bf16.msra.mxu1 %v4809_v14  ;;  %v2217_v7 = vmax.f32 %v2203_v47, 0.0 }
 0x4a2   :  { %4814 = vmatprep.subr.bf16.mxu1 %v4813_v53  ;;  %v2216_v6 = vmax.f32 %v2202_v38, 0.0  ;;  %v3392_v38 = vld [vmem:[%s6564_s8 + $0xb8] sm:$0xff] }
 0x4a4   :  { %2367 = vmatmul.mubr.f32.gmra.mrb[86].mxu1 %v2210_v19 }
 0x4a5   :  { %2372 = vmatprep.mubr.f32.mxu1 %v5093_v0  ;;  %4816 = vmatpush3.bf16.msra.mxu1 %v4813_v53 }
 0x4a6   :  { %4818 = vmatprep.subr.bf16.mxu1 %v4817_v3 }
 0x4a8   :  { %2373 = vmatmul.mubr.f32.gmra.mrb[88].mxu1 %v2211_v4 }
 0x4a9   :  { %2378 = vmatprep.mubr.f32.mxu1 %v5093_v0  ;;  %4820 = vmatpush3.bf16.msra.mxu1 %v4817_v3  ;;  %v3388_v3 = vld [vmem:[%s6564_s8 + $0x98] sm:$0xff] }
 0x4ac   :  { %2379 = vmatmul.mubr.f32.gmra.mrb[90].mxu1 %v2212_v30 }
 0x4ad   :  { %2384 = vmatprep.mubr.f32.mxu1 %v5093_v0 }
 0x4b0   :  { %2385 = vmatmul.mubr.f32.gmra.mrb[92].mxu1 %v2213_v42 }
 0x4b1   :  { %2390 = vmatprep.mubr.f32.mxu1 %v5093_v0 }
 0x4b4   :  { %2391 = vmatmul.mubr.f32.gmra.mrb[94].mxu1 %v2214_v45 }
 0x4b5   :  { %2396 = vmatprep.mubr.f32.mxu1 %v5093_v0 }
 0x4b8   :  { %2397 = vmatmul.mubr.f32.gmra.mrb[96].mxu1 %v2215_v46 }
 0x4b9   :  { %2402 = vmatprep.mubr.f32.mxu1 %v5093_v0 }
 0x4bc   :  { %2403 = vmatmul.mubr.f32.gmra.mrb[98].mxu1 %v2216_v6 }
 0x4bd   :  { %2408 = vmatprep.mubr.f32.mxu1 %v5093_v0  ;;  %v3385_v0 = vld [vmem:[%s6564_s8 + $0x80] sm:$0xff] }
 0x4be   :  { %4273 = vmatprep.mubr.msk.f32.mxu0 %vm2583_vm2, %v3385_v0 }
 0x4c0   :  { %2409 = vmatmul.mubr.f32.gmra.mrb[100].mxu1 %v2217_v7 }
 0x4c1   :  { %4224 = vmatprep.mubr.f32.mxu1 %v2204_v58 }
 0x4c4   :  { %4225 = vmatmul.mubr.f32.vlgmr.msra.gmra.mrb[102].mxu1 %v2205_v32 }
 0x4c5   :  { %4227 = vmatprep.mubr.f32.mxu1 %v2206_v26 }
 0x4c8   :  { %4228 = vmatmul.mubr.f32.gmra.mrb[104].mxu1 %v2207_v16 }
 0x4c9   :  { %4230 = vmatprep.mubr.f32.mxu1 %v2208_v63 }
 0x4cc   :  { %4231 = vmatmul.mubr.f32.gmra.mrb[106].mxu1 %v2209_v27 }
 0x4cd   :  { %4233 = vmatprep.mubr.f32.mxu1 %v2210_v19 }
 0x4d0   :  { %4234 = vmatmul.mubr.f32.gmra.mrb[108].mxu1 %v2211_v4 }
 0x4d1   :  { %4236 = vmatprep.mubr.f32.mxu1 %v2212_v30 }
 0x4d4   :  { %4237 = vmatmul.mubr.f32.gmra.mrb[110].mxu1 %v2213_v42  ;;  %v3390_v42 = vld [vmem:[%s6564_s8 + $0xa8] sm:$0xff] }
 0x4d5   :  { %4239 = vmatprep.mubr.f32.mxu1 %v2214_v45 }
 0x4d8   :  { %4240 = vmatmul.mubr.f32.gmra.mrb[112].mxu1 %v2215_v46 }
 0x4d9   :  { %4242 = vmatprep.mubr.f32.mxu1 %v2216_v6  ;;  %v3393_v6 = vld [vmem:[%s6564_s8 + $0xc0] sm:$0xff] }
 0x4dc   :  { %4243 = vmatmul.mubr.f32.gmra.mrb[114].mxu1 %v2217_v7 }
 0x55f   :  { %v2332_v48 = vpop.f32.mrb[74].mxu1 }
 0x560   :  { %v2334_v51 = vpop.f32.mrb[75].mxu1 }
 0x563   :  { %v2338_v54 = vpop.f32.mrb[76].mxu1 }
 0x564   :  { %v4849_v56 = vpack.c.bf16 %v2338_v54, %v2332_v48  ;;  %v2340_v57 = vpop.f32.mrb[77].mxu1  ;;  %v3394_v48 = vld [vmem:[%s6564_s8 + $0xc8] sm:$0xff]  ;;  %v3395_v54 = vld [vmem:[%s6564_s8 + $0xd0] sm:$0xff] }
 0x565   :  { %v4821_v20 = vpack.c.bf16 %v2340_v57, %v2334_v51 }
 0x567   :  { %v2344_v58 = vpop.f32.mrb[78].mxu1  ;;  %4822 = vmatprep.subr.bf16.mxu0 %v4821_v20 }
 0x568   :  { %v2346_v22 = vpop.f32.mrb[79].mxu1  ;;  %4824 = vmatpush3.bf16.msra.mxu0 %v4821_v20  ;;  %v3396_v20 = vld [vmem:[%s6564_s8 + $0xd8] sm:$0xff] }
 0x56b   :  { %v2350_v59 = vpop.f32.mrb[80].mxu1 }
 0x56c   :  { %v4853_v60 = vpack.c.bf16 %v2350_v59, %v2344_v58  ;;  %v2352_v61 = vpop.f32.mrb[81].mxu1 }
 0x56d   :  { %v4825_v1 = vpack.c.bf16 %v2352_v61, %v2346_v22  ;;  %v3397_v22 = vld [vmem:[%s6564_s8 + $0xe0] sm:$0xff]  ;;  %v3398_v61 = vld [vmem:[%s6564_s8 + $0xe8] sm:$0xff] }
 0x56f   :  { %v2356_v32 = vpop.f32.mrb[82].mxu1  ;;  %4826 = vmatprep.subr.bf16.mxu0 %v4825_v1 }
 0x570   :  { %v2358_v62 = vpop.f32.mrb[83].mxu1  ;;  %4828 = vmatpush3.bf16.msra.mxu0 %v4825_v1 }
 0x573   :  { %v2362_v33 = vpop.f32.mrb[84].mxu1 }
 0x574   :  { %v6325_v8 = vpack.c.bf16 %v2362_v33, %v2356_v32  ;;  %v2364_v37 = vpop.f32.mrb[85].mxu1  ;;  %v3399_v32 = vld [vmem:[%s6564_s8 + $0xf0] sm:$0xff]  ;;  %v2550_v33 = vld [vmem:[%s6564_s8] sm:$0xff] }
 0x575   :  { %v4829_v10 = vpack.c.bf16 %v2364_v37, %v2358_v62  ;;  %v3400_v62 = vld [vmem:[%s6564_s8 + $0xf8] sm:$0xff]  ;;  %v2552_v37 = vld [vmem:[%s6564_s8 + $0x10] sm:$0xff] }
 0x577   :  { %v2368_v2 = vpop.f32.mrb[86].mxu1  ;;  %4830 = vmatprep.subr.bf16.mxu0 %v4829_v10 }
 0x578   :  { %v2370_v11 = vpop.f32.mrb[87].mxu1  ;;  %4832 = vmatpush3.bf16.msra.mxu0 %v4829_v10  ;;  %v2553_v10 = vld [vmem:[%s6564_s8 + $0x18] sm:$0xff] }
 0x57b   :  { %v2374_v26 = vpop.f32.mrb[88].mxu1 }
 0x57c   :  { %v6327_v40 = vpack.c.bf16 %v2374_v26, %v2368_v2  ;;  %v2376_v13 = vpop.f32.mrb[89].mxu1  ;;  %v2554_v2 = vld [vmem:[%s6564_s8 + $0x20] sm:$0xff]  ;;  %v2556_v26 = vld [vmem:[%s6564_s8 + $0x30] sm:$0xff] }
 0x57d   :  { %v4833_v41 = vpack.c.bf16 %v2376_v13, %v2370_v11  ;;  %v2555_v11 = vld [vmem:[%s6564_s8 + $0x28] sm:$0xff]  ;;  %v2558_v13 = vld [vmem:[%s6564_s8 + $0x40] sm:$0xff] }
 0x57f   :  { %v2380_v39 = vpop.f32.mrb[90].mxu1  ;;  %4834 = vmatprep.subr.bf16.mxu0 %v4833_v41 }
 0x580   :  { %v2382_v15 = vpop.f32.mrb[91].mxu1  ;;  %4836 = vmatpush3.bf16.msra.mxu0 %v4833_v41  ;;  %v2559_v41 = vld [vmem:[%s6564_s8 + $0x48] sm:$0xff] }
 0x583   :  { %v2386_v16 = vpop.f32.mrb[92].mxu1 }
 0x584   :  { %v6329_v17 = vpack.c.bf16 %v2386_v16, %v2380_v39  ;;  %v2388_v18 = vpop.f32.mrb[93].mxu1  ;;  %v2560_v39 = vld [vmem:[%s6564_s8 + $0x50] sm:$0xff]  ;;  %v2562_v16 = vld [vmem:[%s6564_s8 + $0x60] sm:$0xff] }
 0x585   :  { %v4837_v52 = vpack.c.bf16 %v2388_v18, %v2382_v15  ;;  %v2561_v15 = vld [vmem:[%s6564_s8 + $0x58] sm:$0xff]  ;;  %v2564_v18 = vld [vmem:[%s6564_s8 + $0x70] sm:$0xff] }
 0x587   :  { %v2392_v35 = vpop.f32.mrb[94].mxu1  ;;  %4838 = vmatprep.subr.bf16.mxu0 %v4837_v52 }
 0x588   :  { %v2394_v21 = vpop.f32.mrb[95].mxu1  ;;  %4840 = vmatpush3.bf16.msra.mxu0 %v4837_v52  ;;  %v2565_v52 = vld [vmem:[%s6564_s8 + $0x78] sm:$0xff] }
 0x58b   :  { %v2398_v50 = vpop.f32.mrb[96].mxu1 }
 0x58c   :  { %v6331_v24 = vpack.c.bf16 %v2398_v50, %v2392_v35  ;;  %v2400_v63 = vpop.f32.mrb[97].mxu1  ;;  %v3433_v35 = vld [vmem:[%s6564_s8 + $0x100] sm:$0xff]  ;;  %v3435_v50 = vld [vmem:[%s6564_s8 + $0x110] sm:$0xff] }
 0x58d   :  { %v4841_v55 = vpack.c.bf16 %v2400_v63, %v2394_v21  ;;  %v3434_v21 = vld [vmem:[%s6564_s8 + $0x108] sm:$0xff]  ;;  %v3437_v63 = vld [vmem:[%s6564_s8 + $0x120] sm:$0xff] }
 0x58f   :  { %v2404_v14 = vpop.f32.mrb[98].mxu1  ;;  %4842 = vmatprep.subr.bf16.mxu0 %v4841_v55 }
 0x590   :  { %v2406_v25 = vpop.f32.mrb[99].mxu1  ;;  %4844 = vmatpush3.bf16.msra.mxu0 %v4841_v55  ;;  %v3438_v55 = vld [vmem:[%s6564_s8 + $0x128] sm:$0xff] }
 0x593   :  { %v2410_v49 = vpop.f32.mrb[100].mxu1 }
 0x594   :  { %v6333_v12 = vpack.c.bf16 %v2410_v49, %v2404_v14  ;;  %v2412_v27 = vpop.f32.mrb[101].mxu1  ;;  %v3439_v14 = vld [vmem:[%s6564_s8 + $0x130] sm:$0xff]  ;;  %v3441_v49 = vld [vmem:[%s6564_s8 + $0x140] sm:$0xff] }
 0x595   :  { %v4845_v28 = vpack.c.bf16 %v2412_v27, %v2406_v25  ;;  %v3440_v25 = vld [vmem:[%s6564_s8 + $0x138] sm:$0xff]  ;;  %v3443_v27 = vld [vmem:[%s6564_s8 + $0x150] sm:$0xff] }
 0x597   :  { %v4226_v29 = vpop.f32.mrb[102].mxu1  ;;  %4846 = vmatprep.subr.bf16.mxu0 %v4845_v28 }
 0x598   :  { %v2481_v53 = vpop.f32.mrb[103].mxu1  ;;  %4848 = vmatpush3.bf16.msra.mxu0 %v4845_v28  ;;  %v3444_v28 = vld [vmem:[%s6564_s8 + $0x158] sm:$0xff] }
 0x599   :  { %v6338_v34 = vpack.c.bf16 %v4226_v29, %v2481_v53  ;;  %4850 = vmatprep.subr.bf16.mxu0 %v4849_v56  ;;  %v3445_v29 = vld [vmem:[%s6564_s8 + $0x160] sm:$0xff]  ;;  %v3446_v53 = vld [vmem:[%s6564_s8 + $0x168] sm:$0xff] }
 0x59b   :  { %v4229_v36 = vpop.f32.mrb[104].mxu1  ;;  %4274 = vmatmul.mubr.msk.f32.vlgmr.msra.gmra.mrb[58].mxu0 %vm2583_vm2, %v3386_v31  ;;  %v3447_v31 = vld [vmem:[%s6564_s8 + $0x170] sm:$0xff] }
 0x59c   :  { %v2491_v19 = vpop.f32.mrb[105].mxu1  ;;  %4852 = vmatpush3.bf16.msra.mxu0 %v4849_v56  ;;  %4276 = vmatprep.mubr.msk.f32.mxu0 %vm2583_vm2, %v3387_v9  ;;  %v3465_v9 = vld [vmem:[%s6565_s9] ss:$0 sm:$0xff] }
 0x59d   :  { %v6348_v4 = vpack.c.bf16 %v4229_v36, %v2491_v19  ;;  %4854 = vmatprep.subr.bf16.mxu0 %v4853_v60 }
 0x59f   :  { %v4232_v23 = vpop.f32.mrb[106].mxu1  ;;  %4277 = vmatmul.mubr.msk.f32.gmra.mrb[60].mxu0 %vm2583_vm2, %v3388_v3 }
 0x5a0   :  { %v2501_v30 = vpop.f32.mrb[107].mxu1  ;;  %4856 = vmatpush3.bf16.msra.mxu0 %v4853_v60  ;;  %4279 = vmatprep.mubr.msk.f32.mxu0 %vm2583_vm2, %v3389_v5 }
 0x5a1   :  { %v4885_v43 = vpack.c.bf16 %v4232_v23, %v2501_v30  ;;  %4858 = vmatprep.subr.bf16.mxu0 %v6325_v8 }
 0x5a3   :  { %v4235_v45 = vpop.f32.mrb[108].mxu1  ;;  %4280 = vmatmul.mubr.msk.f32.gmra.mrb[62].mxu0 %vm2583_vm2, %v3390_v42 }
 0x5a4   :  { %v2511_v46 = vpop.f32.mrb[109].mxu1  ;;  %4860 = vmatpush3.bf16.msra.mxu0 %v6325_v8  ;;  %4282 = vmatprep.mubr.msk.f32.mxu0 %vm2583_vm2, %v3391_v44  ;;  %v2551_v8 = vld [vmem:[%s6564_s8 + $0x8] sm:$0xff] }
 0x5a5   :  { %v4889_v47 = vpack.c.bf16 %v4235_v45, %v2511_v46  ;;  %4862 = vmatprep.subr.bf16.mxu0 %v6327_v40 }
 0x5a7   :  { %v4238_v7 = vpop.f32.mrb[110].mxu1  ;;  %4283 = vmatmul.mubr.msk.f32.gmra.mrb[64].mxu0 %vm2583_vm2, %v3392_v38 }
 0x5a8   :  { %v2521_v0 = vpop.f32.mrb[111].mxu1  ;;  %4864 = vmatpush3.bf16.msra.mxu0 %v6327_v40  ;;  %4285 = vmatprep.mubr.msk.f32.mxu0 %vm2583_vm2, %v3393_v6  ;;  %v2557_v40 = vld [vmem:[%s6564_s8 + $0x38] sm:$0xff] }
 0x5a9   :  { %v4893_v51 = vpack.c.bf16 %v4238_v7, %v2521_v0  ;;  %4866 = vmatprep.subr.bf16.mxu0 %v6329_v17 }
 0x5ab   :  { %v4241_v56 = vpop.f32.mrb[112].mxu1  ;;  %4286 = vmatmul.mubr.msk.f32.gmra.mrb[66].mxu0 %vm2583_vm2, %v3394_v48 }
 0x5ac   :  { %v2531_v57 = vpop.f32.mrb[113].mxu1  ;;  %4868 = vmatpush3.bf16.msra.mxu0 %v6329_v17  ;;  %4288 = vmatprep.mubr.msk.f32.mxu0 %vm2583_vm2, %v3395_v54  ;;  %v2563_v17 = vld [vmem:[%s6564_s8 + $0x68] sm:$0xff] }
 0x5ad   :  { %v4897_v58 = vpack.c.bf16 %v4241_v56, %v2531_v57  ;;  %4870 = vmatprep.subr.bf16.mxu0 %v6331_v24 }
 0x5af   :  { %v4244_v59 = vpop.f32.mrb[114].mxu1  ;;  %4289 = vmatmul.mubr.msk.f32.gmra.mrb[68].mxu0 %vm2583_vm2, %v3396_v20 }
 0x5b0   :  { %v2541_v60 = vpop.f32.mrb[115].mxu1  ;;  %4872 = vmatpush3.bf16.msra.mxu0 %v6331_v24  ;;  %4291 = vmatprep.mubr.msk.f32.mxu0 %vm2583_vm2, %v3397_v22  ;;  %v3436_v24 = vld [vmem:[%s6564_s8 + $0x118] sm:$0xff] }
 0x5b1   :  { %v4901_v1 = vpack.c.bf16 %v4244_v59, %v2541_v60  ;;  %4874 = vmatprep.subr.bf16.mxu0 %v6333_v12 }
 0x5b3   :  { %4292 = vmatmul.mubr.msk.f32.gmra.mrb[70].mxu0 %vm2583_vm2, %v3398_v61 }
 0x5b4   :  { %4876 = vmatpush3.bf16.msra.mxu0 %v6333_v12  ;;  %4294 = vmatprep.mubr.msk.f32.mxu0 %vm2583_vm2, %v3399_v32  ;;  %v3442_v12 = vld [vmem:[%s6564_s8 + $0x148] sm:$0xff] }
 0x5b5   :  { %4878 = vmatprep.subr.bf16.mxu0 %v6338_v34 }
 0x5b7   :  { %4295 = vmatmul.mubr.msk.f32.gmra.mrb[72].mxu0 %vm2583_vm2, %v3400_v62 }
 0x5b8   :  { %4325 = vmatprep.mubr.msk.f32.mxu0 %vm2583_vm2, %v2550_v33 }
 0x5bb   :  { %4326 = vmatmul.mubr.msk.f32.vlgmr.msra.gmra.mrb[58].mxu0 %vm2583_vm2, %v2551_v8 }
 0x5bc   :  { %4880 = vmatpush3.bf16.msra.mxu0 %v6338_v34  ;;  %4328 = vmatprep.mubr.msk.f32.mxu0 %vm2583_vm2, %v2552_v37  ;;  %v3448_v34 = vld [vmem:[%s6564_s8 + $0x178] sm:$0xff]  ;;  %s5094_s8 = smov [#allocation7]  }
 0x5bd   :  { %4882 = vmatprep.subr.bf16.mxu0 %v6348_v4  ;;  %s3240_s9 = sshll.u32 %s5094_s8, 4  ;;  %s3241_s9 = int_to_ptr.vmem [resolvable:$true] %s3240_s9 }
 0x5be   :  { %s5061_s21 = scalar_lea.vmem %s3241_s9, 2048  ;;  %p5066_p3 = scmp.lt.s32.totalorder %s3241_s9, %s3241_s9 }
 0x5bf   :  { %4329 = vmatmul.mubr.msk.f32.gmra.mrb[60].mxu0 %vm2583_vm2, %v2553_v10  ;;  %p5062_p2 = scmp.ne.s32.totalorder %s3241_s9, %s5061_s21  ;;  %p5067_p4 = scmp.lt.s32.totalorder %s5061_s21, %s5061_s21 }
 0x5c0   :  { %4884 = vmatpush3.bf16.msra.mxu0 %v6348_v4  ;;  %4331 = vmatprep.mubr.msk.f32.mxu0 %vm2583_vm2, %v2554_v2 }
 0x5c1   :  { %4886 = vmatprep.subr.bf16.mxu0 %v4885_v43  ;;  %p5068_p5 = por %p5067_p4, %p5066_p3 }
 0x5c3   :  { %4332 = vmatmul.mubr.msk.f32.gmra.mrb[62].mxu0 %vm2583_vm2, %v2555_v11  ;;  %p5069_p6 = pnand %p5068_p5, %p5062_p2 }
 0x5c4   :  { %4888 = vmatpush3.bf16.msra.mxu0 %v4885_v43  ;;  %4334 = vmatprep.mubr.msk.f32.mxu0 %vm2583_vm2, %v2556_v26 }
 0x5c5   :  { %4890 = vmatprep.subr.bf16.mxu0 %v4889_v47 }
 0x5c7   :  { %4335 = vmatmul.mubr.msk.f32.gmra.mrb[64].mxu0 %vm2583_vm2, %v2557_v40 }
 0x5c8   :  { %4892 = vmatpush3.bf16.msra.mxu0 %v4889_v47  ;;  %4337 = vmatprep.mubr.msk.f32.mxu0 %vm2583_vm2, %v2558_v13 }
 0x5c9   :  { %4894 = vmatprep.subr.bf16.mxu0 %v4893_v51 }
 0x5cb   :  { %4338 = vmatmul.mubr.msk.f32.gmra.mrb[66].mxu0 %vm2583_vm2, %v2559_v41 }
 0x5cc   :  { %4896 = vmatpush3.bf16.msra.mxu0 %v4893_v51  ;;  %4340 = vmatprep.mubr.msk.f32.mxu0 %vm2583_vm2, %v2560_v39 }
 0x5cd   :  { %4898 = vmatprep.subr.bf16.mxu0 %v4897_v58 }
 0x5cf   :  { %4341 = vmatmul.mubr.msk.f32.gmra.mrb[68].mxu0 %vm2583_vm2, %v2561_v15 }
 0x5d0   :  { %4900 = vmatpush3.bf16.msra.mxu0 %v4897_v58  ;;  %4343 = vmatprep.mubr.msk.f32.mxu0 %vm2583_vm2, %v2562_v16 }
 0x5d1   :  { %4902 = vmatprep.subr.bf16.mxu0 %v4901_v1 }
 0x5d3   :  { %4344 = vmatmul.mubr.msk.f32.gmra.mrb[70].mxu0 %vm2583_vm2, %v2563_v17 }
 0x5d4   :  { %4904 = vmatpush3.bf16.msra.mxu0 %v4901_v1  ;;  %4346 = vmatprep.mubr.msk.f32.mxu0 %vm2583_vm2, %v2564_v18 }
 0x5d7   :  { %4347 = vmatmul.mubr.msk.f32.gmra.mrb[72].mxu0 %vm2583_vm2, %v2565_v52 }
 0x5d8   :  { %4377 = vmatprep.mubr.msk.f32.mxu0 %vm2583_vm2, %v3433_v35 }
 0x5db   :  { %4378 = vmatmul.mubr.msk.f32.vlgmr.msra.gmra.mrb[58].mxu0 %vm2583_vm2, %v3434_v21 }
 0x5dc   :  { %4380 = vmatprep.mubr.msk.f32.mxu0 %vm2583_vm2, %v3435_v50 }
 0x5df   :  { %4381 = vmatmul.mubr.msk.f32.gmra.mrb[60].mxu0 %vm2583_vm2, %v3436_v24 }
 0x5e0   :  { %4383 = vmatprep.mubr.msk.f32.mxu0 %vm2583_vm2, %v3437_v63 }
 0x5e3   :  { %4384 = vmatmul.mubr.msk.f32.gmra.mrb[62].mxu0 %vm2583_vm2, %v3438_v55 }
 0x5e4   :  { %4386 = vmatprep.mubr.msk.f32.mxu0 %vm2583_vm2, %v3439_v14 }
 0x5e7   :  { %4387 = vmatmul.mubr.msk.f32.gmra.mrb[64].mxu0 %vm2583_vm2, %v3440_v25 }
 0x5e8   :  { %4389 = vmatprep.mubr.msk.f32.mxu0 %vm2583_vm2, %v3441_v49 }
 0x5eb   :  { %4390 = vmatmul.mubr.msk.f32.gmra.mrb[66].mxu0 %vm2583_vm2, %v3442_v12 }
 0x5ec   :  { %4392 = vmatprep.mubr.msk.f32.mxu0 %vm2583_vm2, %v3443_v27 }
 0x5ef   :  { %4393 = vmatmul.mubr.msk.f32.gmra.mrb[68].mxu0 %vm2583_vm2, %v3444_v28 }
 0x5f0   :  { %4395 = vmatprep.mubr.msk.f32.mxu0 %vm2583_vm2, %v3445_v29 }
 0x5f3   :  { %4396 = vmatmul.mubr.msk.f32.gmra.mrb[70].mxu0 %vm2583_vm2, %v3446_v53 }
 0x5f4   :  { %4398 = vmatprep.mubr.msk.f32.mxu0 %vm2583_vm2, %v3447_v31 }
 0x5f7   :  { %4399 = vmatmul.mubr.msk.f32.gmra.mrb[72].mxu0 %vm2583_vm2, %v3448_v34 }
 0x6ae   :  { %v4379_v36 = vpop.f32.mrb[58].mxu0 }
 0x6af   :  { %v3204_v19 = vadd.f32 %v4379_v36, %v3465_v9  ;;  %v3101_v3 = vpop.f32.mrb[59].mxu0 }
 0x6b0   :  { %v3203_v4 = vadd.f32 %v3465_v9, %v3101_v3 }
 0x6b1   :  { %3220 = vst [vmem:[#allocation7 + $0x8] sm:$0xff] %v3204_v19 }
 0x6b2   :  { %3219 = vst [vmem:[#allocation7] sm:$0xff] %v3203_v4  ;;  %v4382_v5 = vpop.f32.mrb[60].mxu0 }
 0x6b3   :  { %v3206_v23 = vadd.f32 %v4382_v5, %v3465_v9  ;;  %v3111_v30 = vpop.f32.mrb[61].mxu0 }
 0x6b4   :  { %v3205_v42 = vadd.f32 %v3465_v9, %v3111_v30 }
 0x6b5   :  { %3222 = vst [vmem:[#allocation7 + $0x18] sm:$0xff] %v3206_v23 }
 0x6b6   :  { %3221 = vst [vmem:[#allocation7 + $0x10] sm:$0xff] %v3205_v42  ;;  %v4385_v43 = vpop.f32.mrb[62].mxu0 }
 0x6b7   :  { %v3208_v44 = vadd.f32 %v4385_v43, %v3465_v9  ;;  %v3121_v45 = vpop.f32.mrb[63].mxu0 }
 0x6b8   :  { %v3207_v46 = vadd.f32 %v3465_v9, %v3121_v45 }
 0x6b9   :  { %3224 = vst [vmem:[#allocation7 + $0x28] sm:$0xff] %v3208_v44 }
 0x6ba   :  { %3223 = vst [vmem:[#allocation7 + $0x20] sm:$0xff] %v3207_v46  ;;  %v4388_v38 = vpop.f32.mrb[64].mxu0 }
 0x6bb   :  { %v3210_v47 = vadd.f32 %v4388_v38, %v3465_v9  ;;  %v3131_v6 = vpop.f32.mrb[65].mxu0 }
 0x6bc   :  { %v3209_v7 = vadd.f32 %v3465_v9, %v3131_v6 }
 0x6bd   :  { %3226 = vst [vmem:[#allocation7 + $0x38] sm:$0xff] %v3210_v47 }
 0x6be   :  { %3225 = vst [vmem:[#allocation7 + $0x30] sm:$0xff] %v3209_v7  ;;  %v4391_v0 = vpop.f32.mrb[66].mxu0 }
 0x6bf   :  { %v3212_v48 = vadd.f32 %v4391_v0, %v3465_v9  ;;  %v3141_v51 = vpop.f32.mrb[67].mxu0 }
 0x6c0   :  { %v3211_v54 = vadd.f32 %v3465_v9, %v3141_v51 }
 0x6c1   :  { %3228 = vst [vmem:[#allocation7 + $0x48] sm:$0xff] %v3212_v48 }
 0x6c2   :  { %3227 = vst [vmem:[#allocation7 + $0x40] sm:$0xff] %v3211_v54  ;;  %v4394_v56 = vpop.f32.mrb[68].mxu0 }
 0x6c3   :  { %v3214_v57 = vadd.f32 %v4394_v56, %v3465_v9  ;;  %v3151_v20 = vpop.f32.mrb[69].mxu0 }
 0x6c4   :  { %v3213_v58 = vadd.f32 %v3465_v9, %v3151_v20 }
 0x6c5   :  { %3230 = vst [vmem:[#allocation7 + $0x58] sm:$0xff] %v3214_v57 }
 0x6c6   :  { %3229 = vst [vmem:[#allocation7 + $0x50] sm:$0xff] %v3213_v58  ;;  %v4397_v22 = vpop.f32.mrb[70].mxu0 }
 0x6c7   :  { %v3216_v59 = vadd.f32 %v4397_v22, %v3465_v9  ;;  %v3161_v60 = vpop.f32.mrb[71].mxu0 }
 0x6c8   :  { %v3215_v61 = vadd.f32 %v3465_v9, %v3161_v60 }
 0x6c9   :  { %3232 = vst [vmem:[#allocation7 + $0x68] sm:$0xff] %v3216_v59 }
 0x6ca   :  { %3231 = vst [vmem:[#allocation7 + $0x60] sm:$0xff] %v3215_v61  ;;  %v4400_v1 = vpop.f32.mrb[72].mxu0 }
 0x6cb   :  { %v3218_v32 = vadd.f32 %v4400_v1, %v3465_v9  ;;  %v3171_v62 = vpop.f32.mrb[73].mxu0 }
 0x6cc   :  { %v3217_v33 = vadd.f32 %v3465_v9, %v3171_v62 }
 0x6cd   :  { %3234 = vst [vmem:[#allocation7 + $0x78] sm:$0xff] %v3218_v32 }
 0x6ce   :  { %3233 = vst [vmem:[#allocation7 + $0x70] sm:$0xff] %v3217_v33 }
 0x6cf   :  { %5072 = shalt.err (!%p5069_p6)
}
 0x6d0   :  { %s5073_s7 = scalar_lea.hbm %s6566_s10, 2048 }
 0x6d1   :  { %p5074_p7 = scmp.ne.s32.totalorder %s6566_s10, %s5073_s7  ;;  %p5077_p8 = scmp.lt.u32.totalorder %s5073_s7, %s6566_s10 }
 0x6d3   :  { %p5079_p9 = pnand %p5077_p8, %p5074_p7 }
 0x6d5   :  { %5082 = shalt.err (!%p5079_p9)
}
 0x6d6   :  { %s5095_s26 = smov 128   ;;  %s5096_s27 = smov 8  }
 0x6d7   :  { %3246 = dma.vmem_to_hbm [thread:$0]  %s3241_s9, 2048, %s6566_s10, [#allocation4], %s5095_s26, %s5095_s26, %s5096_s27  }
 0x6d8   :  { %5087 = dma.done.wait [#allocation4], 2048  }
 0x6d9   :  { %5088 = vsyncadd [#allocation4], 4294965248 }
 0x6da   :  { %3250 = vsyncpa [#allocation3], 1 }
 0x6db   :  { %3251 = vsyncpa [#allocation6], 1 }
 0x6dc   :  { %3252 = vsyncpa [#allocation4], 1 }

</bundles_post_ra>
